<compile_context>
chip_gen: v5e
topology: v5e:2x2
jax: 0.10.0
libtpu: 0.0.40
codegen_flags: <defaults>
</compile_context>

<pallas_src>
import functools
import math

import jax
import jax.numpy as jnp
from jax import lax
from jax.experimental import pallas as pl
from jax.experimental.pallas import tpu as pltpu  # noqa: F401  (TPU backend)


# ----------------------------- config ---------------------------------------
CFG = dict(
    vocab_size=256,
    context_length=8,
    emb_dim=32,
    n_heads=4,
    n_layers=2,
    drop_rate=0.0,     # identity dropout
    qkv_bias=False,
)
BATCH = 2
EPS = 1e-5
NEG_INF = -1e30


# ----------------------------- kernel helpers -------------------------------
def _layernorm(x, scale, shift):
    # x: (T, E) f32, scale/shift: (1, E) f32
    mean = jnp.mean(x, axis=-1, keepdims=True)
    var = jnp.mean((x - mean) ** 2, axis=-1, keepdims=True)
    norm = (x - mean) * lax.rsqrt(var + EPS)
    return scale * norm + shift


def _gelu(x):
    c = math.sqrt(2.0 / math.pi)
    return 0.5 * x * (1.0 + jnp.tanh(c * (x + 0.044715 * x * x * x)))


# ----------------------- fully fused GPT forward kernel ----------------------
def gpt_fused_kernel(
    x_ref, mask_ref,
    ln1s_ref, ln1b_ref, wqkv_ref, wo_ref, bo_ref,
    ln2s_ref, ln2b_ref, w1_ref, b1_ref, w2_ref, b2_ref,
    fns_ref, fnb_ref, wout_ref,
    out_ref,
    *, n_layers, n_heads, head_dim,
):
    f32 = jnp.float32
    bf16 = jnp.bfloat16
    H, hd = n_heads, head_dim
    E = H * hd

    x = x_ref[...]                     # (T, E) f32  -- residual, stays resident
    mask = mask_ref[...]               # (T, T) f32  additive (0 / -1e30)

    for l in range(n_layers):
        # ---------------- attention sub-block ----------------
        h = _layernorm(x, ln1s_ref[l], ln1b_ref[l]).astype(bf16)      # (T, E)
        # Single lane-dense QKV matmul; 1/sqrt(hd) is folded into the Q
        # columns of wqkv on the host.
        qkv = jnp.dot(h, wqkv_ref[l], preferred_element_type=f32)     # (T, 3E)

        ctx_parts = []
        for hh in range(H):                      # static Python loop, H = 4
            o = hh * hd
            qh = qkv[:, o:o + hd].astype(bf16)                        # (T, hd)
            kh = qkv[:, E + o:E + o + hd].astype(bf16)                # (T, hd)
            vh = qkv[:, 2 * E + o:2 * E + o + hd].astype(bf16)        # (T, hd)

            s = lax.dot_general(qh, kh, (((1,), (1,)), ((), ())),
                                preferred_element_type=f32)           # (T, T)
            s = s + mask                                              # f32 add

            m = jnp.max(s, axis=-1, keepdims=True)
            e = jnp.exp(s - m)
            denom = jnp.sum(e, axis=-1, keepdims=True)
            p = (e * pl.reciprocal(denom, approx=True)).astype(bf16)  # (T, T)

            ctx_parts.append(jnp.dot(p, vh, preferred_element_type=f32))

        ctx = jnp.concatenate(ctx_parts, axis=-1).astype(bf16)        # (T, E)
        x = x + jnp.dot(ctx, wo_ref[l],
                        preferred_element_type=f32) + bo_ref[l]       # (T, E)

        # ---------------- feed-forward sub-block ----------------
        h2 = _layernorm(x, ln2s_ref[l], ln2b_ref[l]).astype(bf16)     # (T, E)
        f = jnp.dot(h2, w1_ref[l], preferred_element_type=f32) + b1_ref[l]
        f = _gelu(f)                                                  # (T, 4E) f32
        x = x + (jnp.dot(f.astype(bf16), w2_ref[l],
                         preferred_element_type=f32) + b2_ref[l])     # (T, E)

    # ---------------- final norm + LM head ----------------
    hf = _layernorm(x, fns_ref[...], fnb_ref[...]).astype(bf16)       # (T, E)
    out_ref[...] = jnp.dot(hf, wout_ref[...],
                           preferred_element_type=f32)                # (T, V)


# --------------------------- host-side plumbing ------------------------------
def _build_mask(B, S):
    """Additive mask: 0 where (same batch row AND causal), -1e30 elsewhere."""
    T = B * S
    row = jnp.arange(T)[:, None]
    col = jnp.arange(T)[None, :]
    ok = (row // S == col // S) & (col <= row)
    return jnp.where(ok, 0.0, NEG_INF).astype(jnp.float32)


def _prepare_kernel_params(params, cfg):
    """Stack per-layer params on a leading L axis, pack QKV lane-dense,
    fold the attention scale into Q, cast matmul weights to bf16."""
    E, H, L = cfg["emb_dim"], cfg["n_heads"], cfg["n_layers"]
    hd = E // H
    inv_sqrt_d = 1.0 / math.sqrt(hd)
    blocks = params["blocks"]

    def stack(name):
        return jnp.stack([blk[name] for blk in blocks], axis=0)

    wqkv = jnp.stack(
        [jnp.concatenate([blk["wq"] * inv_sqrt_d, blk["wk"], blk["wv"]], axis=1)
         for blk in blocks], axis=0).astype(jnp.bfloat16)      # (L, E, 3E)

    return [
        stack("ln1_s"), stack("ln1_b"),
        wqkv,
        stack("wo").astype(jnp.bfloat16),                      # (L, E, E)
        stack("bo"),
        stack("ln2_s"), stack("ln2_b"),
        stack("w1").astype(jnp.bfloat16), stack("b1"),         # (L, E, 4E)
        stack("w2").astype(jnp.bfloat16), stack("b2"),         # (L, 4E, E)
        params["fn_s"], params["fn_b"],
        params["w_out"].astype(jnp.bfloat16),                  # (E, V)
    ]


def make_gpt_forward(params, cfg, batch, seq_len):
    """Precompute packed weights + mask ONCE and return a jitted forward."""
    E, V = cfg["emb_dim"], cfg["vocab_size"]
    H, L = cfg["n_heads"], cfg["n_layers"]
    hd = E // H
    T = batch * seq_len

    kparams = _prepare_kernel_params(params, cfg)      # host prep hoisted
    mask = _build_mask(batch, seq_len)                 # static, built once
    tok_emb = params["tok_emb"].astype(jnp.float32)
    pos_emb = params["pos_emb"][:seq_len].astype(jnp.float32)

    kernel = functools.partial(
        gpt_fused_kernel, n_layers=L, n_heads=H, head_dim=hd)

    # Single fused invocation: no grid, all operands are whole-array VMEM
    # blocks (total footprint << 1 MiB on every TPU generation).
    fused = pl.pallas_call(
        kernel,
        out_shape=jax.ShapeDtypeStruct((T, V), jnp.float32),
    )

    @jax.jit
    def forward(in_idx):
        # glue: embedding gather + positional add (dynamic gather stays in JAX)
        tok = jnp.take(tok_emb, in_idx, axis=0)                # (B, S, E)
        x = (tok + pos_emb[None, :, :]).reshape(T, E)          # (T, E)
        # drop_emb: identity (drop_rate = 0)
        logits = fused(x, mask, *kparams)
        return logits.reshape(batch, seq_len, V)

    return forward


# ----------------------------- parameter init --------------------------------
def init_params(cfg, key):
    E, V, C, L = (cfg["emb_dim"], cfg["vocab_size"],
                  cfg["context_length"], cfg["n_layers"])
    keys = iter(jax.random.split(key, 3 + 6 * L))

    def w(shape, scale=0.02):
        return (scale * jax.random.normal(next(keys), shape)).astype(jnp.float32)

    params = {
        "tok_emb": w((V, E)),
        "pos_emb": w((C, E)),
        "fn_s": jnp.ones((1, E), jnp.float32),
        "fn_b": jnp.zeros((1, E), jnp.float32),
        "w_out": w((E, V)),          # (in, out): out_head weight^T
        "blocks": [],
    }
    for _ in range(L):
        params["blocks"].append({
            "ln1_s": jnp.ones((1, E), jnp.float32),
            "ln1_b": jnp.zeros((1, E), jnp.float32),
            "wq": w((E, E)), "wk": w((E, E)), "wv": w((E, E)),
            "wo": w((E, E)), "bo": jnp.zeros((1, E), jnp.float32),
            "ln2_s": jnp.ones((1, E), jnp.float32),
            "ln2_b": jnp.zeros((1, E), jnp.float32),
            "w1": w((E, 4 * E)), "b1": jnp.zeros((1, 4 * E), jnp.float32),
            "w2": w((4 * E, E)), "b2": jnp.zeros((1, E), jnp.float32),
        })
    return params


# ----------------------------- pure-JAX reference ----------------------------
def gpt_reference(params, in_idx, cfg):
    def ln(x, s, b):
        m = jnp.mean(x, -1, keepdims=True)
        v = jnp.mean((x - m) ** 2, -1, keepdims=True)
        return s * ((x - m) / jnp.sqrt(v + EPS)) + b

    def gelu(x):
        return 0.5 * x * (1.0 + jnp.tanh(
            math.sqrt(2.0 / math.pi) * (x + 0.044715 * x ** 3)))

    B, S = in_idx.shape
    E, H = cfg["emb_dim"], cfg["n_heads"]
    hd = E // H
    x = jnp.take(params["tok_emb"], in_idx, axis=0) + params["pos_emb"][:S][None]
    mask = jnp.triu(jnp.ones((S, S), bool), k=1)
    for blk in params["blocks"]:
        h = ln(x, blk["ln1_s"], blk["ln1_b"])
        q = h @ blk["wq"]
        k = h @ blk["wk"]
        v = h @ blk["wv"]
        q = q.reshape(B, S, H, hd).transpose(0, 2, 1, 3)
        k = k.reshape(B, S, H, hd).transpose(0, 2, 1, 3)
        v = v.reshape(B, S, H, hd).transpose(0, 2, 1, 3)
        sc = jnp.einsum("bhqd,bhkd->bhqk", q, k) / math.sqrt(hd)
        sc = jnp.where(mask, -jnp.inf, sc)
        p = jax.nn.softmax(sc, axis=-1)
        ctx = jnp.einsum("bhqk,bhkd->bhqd", p, v).transpose(0, 2, 1, 3)
        ctx = ctx.reshape(B, S, E)
        x = x + (ctx @ blk["wo"] + blk["bo"])
        h2 = ln(x, blk["ln2_s"], blk["ln2_b"])
        x = x + (gelu(h2 @ blk["w1"] + blk["b1"]) @ blk["w2"] + blk["b2"])
    x = ln(x, params["fn_s"], params["fn_b"])
    return x @ params["w_out"]


# ----------------------------- main -------------------------------------------
if __name__ == "__main__":
    key = jax.random.PRNGKey(0)
    pkey, dkey = jax.random.split(key)
    params = init_params(CFG, pkey)

    in_idx = jax.random.randint(
        dkey, (BATCH, CFG["context_length"]), 0, CFG["vocab_size"],
        dtype=jnp.int32)

    forward = make_gpt_forward(params, CFG, BATCH, CFG["context_length"])
    logits = jax.block_until_ready(forward(in_idx))
    assert logits.shape == (BATCH, CFG["context_length"], CFG["vocab_size"])

    ref = jax.block_until_ready(gpt_reference(params, in_idx, CFG))
    max_err = float(jnp.max(jnp.abs(logits - ref)))
    assert max_err < 5e-2, f"mismatch vs reference: {max_err}"

    print("KERNEL_OK")
</pallas_src>

<mosaic_0001>
module attributes {stable_mosaic.version = 11 : i64} {
  func.func @gpt_fused_kernel(%arg0: memref<16x32xf32, #tpu.memory_space<vmem>>, %arg1: memref<16x16xf32, #tpu.memory_space<vmem>>, %arg2: memref<2x1x32xf32, #tpu.memory_space<vmem>>, %arg3: memref<2x1x32xf32, #tpu.memory_space<vmem>>, %arg4: memref<2x32x96xbf16, #tpu.memory_space<vmem>>, %arg5: memref<2x32x32xbf16, #tpu.memory_space<vmem>>, %arg6: memref<2x1x32xf32, #tpu.memory_space<vmem>>, %arg7: memref<2x1x32xf32, #tpu.memory_space<vmem>>, %arg8: memref<2x1x32xf32, #tpu.memory_space<vmem>>, %arg9: memref<2x32x128xbf16, #tpu.memory_space<vmem>>, %arg10: memref<2x1x128xf32, #tpu.memory_space<vmem>>, %arg11: memref<2x128x32xbf16, #tpu.memory_space<vmem>>, %arg12: memref<2x1x32xf32, #tpu.memory_space<vmem>>, %arg13: memref<1x32xf32, #tpu.memory_space<vmem>>, %arg14: memref<1x32xf32, #tpu.memory_space<vmem>>, %arg15: memref<32x256xbf16, #tpu.memory_space<vmem>>, %arg16: memref<16x256xf32, #tpu.memory_space<vmem>>) attributes {dimension_semantics = [], scalar_prefetch = 0 : i64, scratch_operands = 0 : i64, tpu.core_type = #tpu.core_type<tc>} {
    %c0 = arith.constant 0 : index
    %c0_0 = arith.constant 0 : index
    %0 = vector.load %arg0[%c0, %c0_0] : memref<16x32xf32, #tpu.memory_space<vmem>>, vector<16x32xf32>
    %c0_1 = arith.constant 0 : index
    %c0_2 = arith.constant 0 : index
    %1 = vector.load %arg1[%c0_1, %c0_2] : memref<16x16xf32, #tpu.memory_space<vmem>>, vector<16x16xf32>
    %c0_3 = arith.constant 0 : index
    %c0_4 = arith.constant 0 : index
    %c0_5 = arith.constant 0 : index
    %2 = vector.load %arg2[%c0_3, %c0_4, %c0_5] : memref<2x1x32xf32, #tpu.memory_space<vmem>>, vector<1x1x32xf32>
    %3 = vector.shape_cast %2 : vector<1x1x32xf32> to vector<1x32xf32>
    %c0_6 = arith.constant 0 : index
    %c0_7 = arith.constant 0 : index
    %c0_8 = arith.constant 0 : index
    %4 = vector.load %arg3[%c0_6, %c0_7, %c0_8] : memref<2x1x32xf32, #tpu.memory_space<vmem>>, vector<1x1x32xf32>
    %5 = vector.shape_cast %4 : vector<1x1x32xf32> to vector<1x32xf32>
    %cst = arith.constant dense<0.000000e+00> : vector<16xf32>
    %6 = vector.multi_reduction <add>, %0, %cst [1] : vector<16x32xf32> to vector<16xf32>
    %7 = vector.shape_cast %6 : vector<16xf32> to vector<16x1xf32>
    %cst_9 = arith.constant 3.200000e+01 : f32
    %8 = vector.broadcast %cst_9 : f32 to vector<16x1xf32>
    %9 = arith.divf %7, %8 : vector<16x1xf32>
    %10 = vector.broadcast %9 : vector<16x1xf32> to vector<16x32xf32>
    %11 = arith.subf %0, %10 : vector<16x32xf32>
    %12 = arith.mulf %11, %11 : vector<16x32xf32>
    %cst_10 = arith.constant dense<0.000000e+00> : vector<16xf32>
    %13 = vector.multi_reduction <add>, %12, %cst_10 [1] : vector<16x32xf32> to vector<16xf32>
    %14 = vector.shape_cast %13 : vector<16xf32> to vector<16x1xf32>
    %cst_11 = arith.constant 3.200000e+01 : f32
    %15 = vector.broadcast %cst_11 : f32 to vector<16x1xf32>
    %16 = arith.divf %14, %15 : vector<16x1xf32>
    %17 = vector.broadcast %9 : vector<16x1xf32> to vector<16x32xf32>
    %18 = arith.subf %0, %17 : vector<16x32xf32>
    %cst_12 = arith.constant 9.99999974E-6 : f32
    %19 = vector.broadcast %cst_12 : f32 to vector<16x1xf32>
    %20 = arith.addf %16, %19 : vector<16x1xf32>
    %21 = math.rsqrt %20 : vector<16x1xf32>
    %22 = vector.broadcast %21 : vector<16x1xf32> to vector<16x32xf32>
    %23 = arith.mulf %18, %22 : vector<16x32xf32>
    %24 = vector.broadcast %3 : vector<1x32xf32> to vector<16x32xf32>
    %25 = arith.mulf %24, %23 : vector<16x32xf32>
    %26 = vector.broadcast %5 : vector<1x32xf32> to vector<16x32xf32>
    %27 = arith.addf %25, %26 : vector<16x32xf32>
    %28 = arith.truncf %27 : vector<16x32xf32> to vector<16x32xbf16>
    %c0_13 = arith.constant 0 : index
    %c0_14 = arith.constant 0 : index
    %c0_15 = arith.constant 0 : index
    %29 = vector.load %arg4[%c0_13, %c0_14, %c0_15] : memref<2x32x96xbf16, #tpu.memory_space<vmem>>, vector<1x32x96xbf16>
    %30 = vector.shape_cast %29 : vector<1x32x96xbf16> to vector<32x96xbf16>
    %cst_16 = arith.constant dense<0.000000e+00> : vector<16x96xf32>
    %31 = tpu.matmul %28, %30, %cst_16 {dimension_numbers = #tpu.dot_dimension_numbers<[1], [0], [0], [1], [0, 0, 1, 1], [], []>} : vector<16x32xbf16>, vector<32x96xbf16>, vector<16x96xf32> -> vector<16x96xf32>
    %32 = vector.extract_strided_slice %31 {offsets = [0, 0], sizes = [16, 8], strides = [1, 1]} : vector<16x96xf32> to vector<16x8xf32>
    %33 = arith.truncf %32 : vector<16x8xf32> to vector<16x8xbf16>
    %34 = vector.extract_strided_slice %31 {offsets = [0, 32], sizes = [16, 8], strides = [1, 1]} : vector<16x96xf32> to vector<16x8xf32>
    %35 = arith.truncf %34 : vector<16x8xf32> to vector<16x8xbf16>
    %36 = vector.extract_strided_slice %31 {offsets = [0, 64], sizes = [16, 8], strides = [1, 1]} : vector<16x96xf32> to vector<16x8xf32>
    %37 = arith.truncf %36 : vector<16x8xf32> to vector<16x8xbf16>
    %cst_17 = arith.constant dense<0.000000e+00> : vector<16x16xf32>
    %38 = tpu.matmul %33, %35, %cst_17 {dimension_numbers = #tpu.dot_dimension_numbers<[1], [1], [0], [0], [0, 0, 1, 0], [], []>} : vector<16x8xbf16>, vector<16x8xbf16>, vector<16x16xf32> -> vector<16x16xf32>
    %39 = arith.addf %38, %1 : vector<16x16xf32>
    %cst_18 = arith.constant dense<0xFF800000> : vector<16xf32>
    %40 = vector.multi_reduction <maximumf>, %39, %cst_18 [1] : vector<16x16xf32> to vector<16xf32>
    %41 = vector.shape_cast %40 : vector<16xf32> to vector<16x1xf32>
    %42 = vector.broadcast %41 : vector<16x1xf32> to vector<16x16xf32>
    %43 = arith.subf %39, %42 : vector<16x16xf32>
    %44 = math.exp %43 : vector<16x16xf32>
    %cst_19 = arith.constant dense<0.000000e+00> : vector<16xf32>
    %45 = vector.multi_reduction <add>, %44, %cst_19 [1] : vector<16x16xf32> to vector<16xf32>
    %46 = vector.shape_cast %45 : vector<16xf32> to vector<16x1xf32>
    %47 = tpu.reciprocal %46 {approx = true} : vector<16x1xf32> -> vector<16x1xf32>
    %48 = vector.broadcast %47 : vector<16x1xf32> to vector<16x16xf32>
    %49 = arith.mulf %44, %48 : vector<16x16xf32>
    %50 = arith.truncf %49 : vector<16x16xf32> to vector<16x16xbf16>
    %cst_20 = arith.constant dense<0.000000e+00> : vector<16x8xf32>
    %51 = tpu.matmul %50, %37, %cst_20 {dimension_numbers = #tpu.dot_dimension_numbers<[1], [0], [0], [1], [0, 0, 1, 1], [], []>} : vector<16x16xbf16>, vector<16x8xbf16>, vector<16x8xf32> -> vector<16x8xf32>
    %52 = vector.extract_strided_slice %31 {offsets = [0, 8], sizes = [16, 8], strides = [1, 1]} : vector<16x96xf32> to vector<16x8xf32>
    %53 = arith.truncf %52 : vector<16x8xf32> to vector<16x8xbf16>
    %54 = vector.extract_strided_slice %31 {offsets = [0, 40], sizes = [16, 8], strides = [1, 1]} : vector<16x96xf32> to vector<16x8xf32>
    %55 = arith.truncf %54 : vector<16x8xf32> to vector<16x8xbf16>
    %56 = vector.extract_strided_slice %31 {offsets = [0, 72], sizes = [16, 8], strides = [1, 1]} : vector<16x96xf32> to vector<16x8xf32>
    %57 = arith.truncf %56 : vector<16x8xf32> to vector<16x8xbf16>
    %cst_21 = arith.constant dense<0.000000e+00> : vector<16x16xf32>
    %58 = tpu.matmul %53, %55, %cst_21 {dimension_numbers = #tpu.dot_dimension_numbers<[1], [1], [0], [0], [0, 0, 1, 0], [], []>} : vector<16x8xbf16>, vector<16x8xbf16>, vector<16x16xf32> -> vector<16x16xf32>
    %59 = arith.addf %58, %1 : vector<16x16xf32>
    %cst_22 = arith.constant dense<0xFF800000> : vector<16xf32>
    %60 = vector.multi_reduction <maximumf>, %59, %cst_22 [1] : vector<16x16xf32> to vector<16xf32>
    %61 = vector.shape_cast %60 : vector<16xf32> to vector<16x1xf32>
    %62 = vector.broadcast %61 : vector<16x1xf32> to vector<16x16xf32>
    %63 = arith.subf %59, %62 : vector<16x16xf32>
    %64 = math.exp %63 : vector<16x16xf32>
    %cst_23 = arith.constant dense<0.000000e+00> : vector<16xf32>
    %65 = vector.multi_reduction <add>, %64, %cst_23 [1] : vector<16x16xf32> to vector<16xf32>
    %66 = vector.shape_cast %65 : vector<16xf32> to vector<16x1xf32>
    %67 = tpu.reciprocal %66 {approx = true} : vector<16x1xf32> -> vector<16x1xf32>
    %68 = vector.broadcast %67 : vector<16x1xf32> to vector<16x16xf32>
    %69 = arith.mulf %64, %68 : vector<16x16xf32>
    %70 = arith.truncf %69 : vector<16x16xf32> to vector<16x16xbf16>
    %cst_24 = arith.constant dense<0.000000e+00> : vector<16x8xf32>
    %71 = tpu.matmul %70, %57, %cst_24 {dimension_numbers = #tpu.dot_dimension_numbers<[1], [0], [0], [1], [0, 0, 1, 1], [], []>} : vector<16x16xbf16>, vector<16x8xbf16>, vector<16x8xf32> -> vector<16x8xf32>
    %72 = vector.extract_strided_slice %31 {offsets = [0, 16], sizes = [16, 8], strides = [1, 1]} : vector<16x96xf32> to vector<16x8xf32>
    %73 = arith.truncf %72 : vector<16x8xf32> to vector<16x8xbf16>
    %74 = vector.extract_strided_slice %31 {offsets = [0, 48], sizes = [16, 8], strides = [1, 1]} : vector<16x96xf32> to vector<16x8xf32>
    %75 = arith.truncf %74 : vector<16x8xf32> to vector<16x8xbf16>
    %76 = vector.extract_strided_slice %31 {offsets = [0, 80], sizes = [16, 8], strides = [1, 1]} : vector<16x96xf32> to vector<16x8xf32>
    %77 = arith.truncf %76 : vector<16x8xf32> to vector<16x8xbf16>
    %cst_25 = arith.constant dense<0.000000e+00> : vector<16x16xf32>
    %78 = tpu.matmul %73, %75, %cst_25 {dimension_numbers = #tpu.dot_dimension_numbers<[1], [1], [0], [0], [0, 0, 1, 0], [], []>} : vector<16x8xbf16>, vector<16x8xbf16>, vector<16x16xf32> -> vector<16x16xf32>
    %79 = arith.addf %78, %1 : vector<16x16xf32>
    %cst_26 = arith.constant dense<0xFF800000> : vector<16xf32>
    %80 = vector.multi_reduction <maximumf>, %79, %cst_26 [1] : vector<16x16xf32> to vector<16xf32>
    %81 = vector.shape_cast %80 : vector<16xf32> to vector<16x1xf32>
    %82 = vector.broadcast %81 : vector<16x1xf32> to vector<16x16xf32>
    %83 = arith.subf %79, %82 : vector<16x16xf32>
    %84 = math.exp %83 : vector<16x16xf32>
    %cst_27 = arith.constant dense<0.000000e+00> : vector<16xf32>
    %85 = vector.multi_reduction <add>, %84, %cst_27 [1] : vector<16x16xf32> to vector<16xf32>
    %86 = vector.shape_cast %85 : vector<16xf32> to vector<16x1xf32>
    %87 = tpu.reciprocal %86 {approx = true} : vector<16x1xf32> -> vector<16x1xf32>
    %88 = vector.broadcast %87 : vector<16x1xf32> to vector<16x16xf32>
    %89 = arith.mulf %84, %88 : vector<16x16xf32>
    %90 = arith.truncf %89 : vector<16x16xf32> to vector<16x16xbf16>
    %cst_28 = arith.constant dense<0.000000e+00> : vector<16x8xf32>
    %91 = tpu.matmul %90, %77, %cst_28 {dimension_numbers = #tpu.dot_dimension_numbers<[1], [0], [0], [1], [0, 0, 1, 1], [], []>} : vector<16x16xbf16>, vector<16x8xbf16>, vector<16x8xf32> -> vector<16x8xf32>
    %92 = vector.extract_strided_slice %31 {offsets = [0, 24], sizes = [16, 8], strides = [1, 1]} : vector<16x96xf32> to vector<16x8xf32>
    %93 = arith.truncf %92 : vector<16x8xf32> to vector<16x8xbf16>
    %94 = vector.extract_strided_slice %31 {offsets = [0, 56], sizes = [16, 8], strides = [1, 1]} : vector<16x96xf32> to vector<16x8xf32>
    %95 = arith.truncf %94 : vector<16x8xf32> to vector<16x8xbf16>
    %96 = vector.extract_strided_slice %31 {offsets = [0, 88], sizes = [16, 8], strides = [1, 1]} : vector<16x96xf32> to vector<16x8xf32>
    %97 = arith.truncf %96 : vector<16x8xf32> to vector<16x8xbf16>
    %cst_29 = arith.constant dense<0.000000e+00> : vector<16x16xf32>
    %98 = tpu.matmul %93, %95, %cst_29 {dimension_numbers = #tpu.dot_dimension_numbers<[1], [1], [0], [0], [0, 0, 1, 0], [], []>} : vector<16x8xbf16>, vector<16x8xbf16>, vector<16x16xf32> -> vector<16x16xf32>
    %99 = arith.addf %98, %1 : vector<16x16xf32>
    %cst_30 = arith.constant dense<0xFF800000> : vector<16xf32>
    %100 = vector.multi_reduction <maximumf>, %99, %cst_30 [1] : vector<16x16xf32> to vector<16xf32>
    %101 = vector.shape_cast %100 : vector<16xf32> to vector<16x1xf32>
    %102 = vector.broadcast %101 : vector<16x1xf32> to vector<16x16xf32>
    %103 = arith.subf %99, %102 : vector<16x16xf32>
    %104 = math.exp %103 : vector<16x16xf32>
    %cst_31 = arith.constant dense<0.000000e+00> : vector<16xf32>
    %105 = vector.multi_reduction <add>, %104, %cst_31 [1] : vector<16x16xf32> to vector<16xf32>
    %106 = vector.shape_cast %105 : vector<16xf32> to vector<16x1xf32>
    %107 = tpu.reciprocal %106 {approx = true} : vector<16x1xf32> -> vector<16x1xf32>
    %108 = vector.broadcast %107 : vector<16x1xf32> to vector<16x16xf32>
    %109 = arith.mulf %104, %108 : vector<16x16xf32>
    %110 = arith.truncf %109 : vector<16x16xf32> to vector<16x16xbf16>
    %cst_32 = arith.constant dense<0.000000e+00> : vector<16x8xf32>
    %111 = tpu.matmul %110, %97, %cst_32 {dimension_numbers = #tpu.dot_dimension_numbers<[1], [0], [0], [1], [0, 0, 1, 1], [], []>} : vector<16x16xbf16>, vector<16x8xbf16>, vector<16x8xf32> -> vector<16x8xf32>
    %112 = tpu.concatenate %51, %71, %91, %111 in 1 : vector<16x8xf32>, vector<16x8xf32>, vector<16x8xf32>, vector<16x8xf32> -> vector<16x32xf32>
    %113 = arith.truncf %112 : vector<16x32xf32> to vector<16x32xbf16>
    %c0_33 = arith.constant 0 : index
    %c0_34 = arith.constant 0 : index
    %c0_35 = arith.constant 0 : index
    %114 = vector.load %arg5[%c0_33, %c0_34, %c0_35] : memref<2x32x32xbf16, #tpu.memory_space<vmem>>, vector<1x32x32xbf16>
    %115 = vector.shape_cast %114 : vector<1x32x32xbf16> to vector<32x32xbf16>
    %cst_36 = arith.constant dense<0.000000e+00> : vector<16x32xf32>
    %116 = tpu.matmul %113, %115, %cst_36 {dimension_numbers = #tpu.dot_dimension_numbers<[1], [0], [0], [1], [0, 0, 1, 1], [], []>} : vector<16x32xbf16>, vector<32x32xbf16>, vector<16x32xf32> -> vector<16x32xf32>
    %117 = arith.addf %0, %116 : vector<16x32xf32>
    %c0_37 = arith.constant 0 : index
    %c0_38 = arith.constant 0 : index
    %c0_39 = arith.constant 0 : index
    %118 = vector.load %arg6[%c0_37, %c0_38, %c0_39] : memref<2x1x32xf32, #tpu.memory_space<vmem>>, vector<1x1x32xf32>
    %119 = vector.shape_cast %118 : vector<1x1x32xf32> to vector<1x32xf32>
    %120 = vector.broadcast %119 : vector<1x32xf32> to vector<16x32xf32>
    %121 = arith.addf %117, %120 : vector<16x32xf32>
    %c0_40 = arith.constant 0 : index
    %c0_41 = arith.constant 0 : index
    %c0_42 = arith.constant 0 : index
    %122 = vector.load %arg7[%c0_40, %c0_41, %c0_42] : memref<2x1x32xf32, #tpu.memory_space<vmem>>, vector<1x1x32xf32>
    %123 = vector.shape_cast %122 : vector<1x1x32xf32> to vector<1x32xf32>
    %c0_43 = arith.constant 0 : index
    %c0_44 = arith.constant 0 : index
    %c0_45 = arith.constant 0 : index
    %124 = vector.load %arg8[%c0_43, %c0_44, %c0_45] : memref<2x1x32xf32, #tpu.memory_space<vmem>>, vector<1x1x32xf32>
    %125 = vector.shape_cast %124 : vector<1x1x32xf32> to vector<1x32xf32>
    %cst_46 = arith.constant dense<0.000000e+00> : vector<16xf32>
    %126 = vector.multi_reduction <add>, %121, %cst_46 [1] : vector<16x32xf32> to vector<16xf32>
    %127 = vector.shape_cast %126 : vector<16xf32> to vector<16x1xf32>
    %cst_47 = arith.constant 3.200000e+01 : f32
    %128 = vector.broadcast %cst_47 : f32 to vector<16x1xf32>
    %129 = arith.divf %127, %128 : vector<16x1xf32>
    %130 = vector.broadcast %129 : vector<16x1xf32> to vector<16x32xf32>
    %131 = arith.subf %121, %130 : vector<16x32xf32>
    %132 = arith.mulf %131, %131 : vector<16x32xf32>
    %cst_48 = arith.constant dense<0.000000e+00> : vector<16xf32>
    %133 = vector.multi_reduction <add>, %132, %cst_48 [1] : vector<16x32xf32> to vector<16xf32>
    %134 = vector.shape_cast %133 : vector<16xf32> to vector<16x1xf32>
    %cst_49 = arith.constant 3.200000e+01 : f32
    %135 = vector.broadcast %cst_49 : f32 to vector<16x1xf32>
    %136 = arith.divf %134, %135 : vector<16x1xf32>
    %137 = vector.broadcast %129 : vector<16x1xf32> to vector<16x32xf32>
    %138 = arith.subf %121, %137 : vector<16x32xf32>
    %cst_50 = arith.constant 9.99999974E-6 : f32
    %139 = vector.broadcast %cst_50 : f32 to vector<16x1xf32>
    %140 = arith.addf %136, %139 : vector<16x1xf32>
    %141 = math.rsqrt %140 : vector<16x1xf32>
    %142 = vector.broadcast %141 : vector<16x1xf32> to vector<16x32xf32>
    %143 = arith.mulf %138, %142 : vector<16x32xf32>
    %144 = vector.broadcast %123 : vector<1x32xf32> to vector<16x32xf32>
    %145 = arith.mulf %144, %143 : vector<16x32xf32>
    %146 = vector.broadcast %125 : vector<1x32xf32> to vector<16x32xf32>
    %147 = arith.addf %145, %146 : vector<16x32xf32>
    %148 = arith.truncf %147 : vector<16x32xf32> to vector<16x32xbf16>
    %c0_51 = arith.constant 0 : index
    %c0_52 = arith.constant 0 : index
    %c0_53 = arith.constant 0 : index
    %149 = vector.load %arg9[%c0_51, %c0_52, %c0_53] : memref<2x32x128xbf16, #tpu.memory_space<vmem>>, vector<1x32x128xbf16>
    %150 = vector.shape_cast %149 : vector<1x32x128xbf16> to vector<32x128xbf16>
    %cst_54 = arith.constant dense<0.000000e+00> : vector<16x128xf32>
    %151 = tpu.matmul %148, %150, %cst_54 {dimension_numbers = #tpu.dot_dimension_numbers<[1], [0], [0], [1], [0, 0, 1, 1], [], []>} : vector<16x32xbf16>, vector<32x128xbf16>, vector<16x128xf32> -> vector<16x128xf32>
    %c0_55 = arith.constant 0 : index
    %c0_56 = arith.constant 0 : index
    %c0_57 = arith.constant 0 : index
    %152 = vector.load %arg10[%c0_55, %c0_56, %c0_57] : memref<2x1x128xf32, #tpu.memory_space<vmem>>, vector<1x1x128xf32>
    %153 = vector.shape_cast %152 : vector<1x1x128xf32> to vector<1x128xf32>
    %154 = vector.broadcast %153 : vector<1x128xf32> to vector<16x128xf32>
    %155 = arith.addf %151, %154 : vector<16x128xf32>
    %cst_58 = arith.constant 5.000000e-01 : f32
    %156 = vector.broadcast %cst_58 : f32 to vector<16x128xf32>
    %157 = arith.mulf %156, %155 : vector<16x128xf32>
    %cst_59 = arith.constant 4.471500e-02 : f32
    %158 = vector.broadcast %cst_59 : f32 to vector<16x128xf32>
    %159 = arith.mulf %158, %155 : vector<16x128xf32>
    %160 = arith.mulf %159, %155 : vector<16x128xf32>
    %161 = arith.mulf %160, %155 : vector<16x128xf32>
    %162 = arith.addf %155, %161 : vector<16x128xf32>
    %cst_60 = arith.constant 0.797884583 : f32
    %163 = vector.broadcast %cst_60 : f32 to vector<16x128xf32>
    %164 = arith.mulf %163, %162 : vector<16x128xf32>
    %165 = math.tanh %164 : vector<16x128xf32>
    %cst_61 = arith.constant 1.000000e+00 : f32
    %166 = vector.broadcast %cst_61 : f32 to vector<16x128xf32>
    %167 = arith.addf %166, %165 : vector<16x128xf32>
    %168 = arith.mulf %157, %167 : vector<16x128xf32>
    %169 = arith.truncf %168 : vector<16x128xf32> to vector<16x128xbf16>
    %c0_62 = arith.constant 0 : index
    %c0_63 = arith.constant 0 : index
    %c0_64 = arith.constant 0 : index
    %170 = vector.load %arg11[%c0_62, %c0_63, %c0_64] : memref<2x128x32xbf16, #tpu.memory_space<vmem>>, vector<1x128x32xbf16>
    %171 = vector.shape_cast %170 : vector<1x128x32xbf16> to vector<128x32xbf16>
    %cst_65 = arith.constant dense<0.000000e+00> : vector<16x32xf32>
    %172 = tpu.matmul %169, %171, %cst_65 {dimension_numbers = #tpu.dot_dimension_numbers<[1], [0], [0], [1], [0, 0, 1, 1], [], []>} : vector<16x128xbf16>, vector<128x32xbf16>, vector<16x32xf32> -> vector<16x32xf32>
    %c0_66 = arith.constant 0 : index
    %c0_67 = arith.constant 0 : index
    %c0_68 = arith.constant 0 : index
    %173 = vector.load %arg12[%c0_66, %c0_67, %c0_68] : memref<2x1x32xf32, #tpu.memory_space<vmem>>, vector<1x1x32xf32>
    %174 = vector.shape_cast %173 : vector<1x1x32xf32> to vector<1x32xf32>
    %175 = vector.broadcast %174 : vector<1x32xf32> to vector<16x32xf32>
    %176 = arith.addf %172, %175 : vector<16x32xf32>
    %177 = arith.addf %121, %176 : vector<16x32xf32>
    %c1 = arith.constant 1 : index
    %c0_69 = arith.constant 0 : index
    %c0_70 = arith.constant 0 : index
    %178 = vector.load %arg2[%c1, %c0_69, %c0_70] : memref<2x1x32xf32, #tpu.memory_space<vmem>>, vector<1x1x32xf32>
    %179 = vector.shape_cast %178 : vector<1x1x32xf32> to vector<1x32xf32>
    %c1_71 = arith.constant 1 : index
    %c0_72 = arith.constant 0 : index
    %c0_73 = arith.constant 0 : index
    %180 = vector.load %arg3[%c1_71, %c0_72, %c0_73] : memref<2x1x32xf32, #tpu.memory_space<vmem>>, vector<1x1x32xf32>
    %181 = vector.shape_cast %180 : vector<1x1x32xf32> to vector<1x32xf32>
    %cst_74 = arith.constant dense<0.000000e+00> : vector<16xf32>
    %182 = vector.multi_reduction <add>, %177, %cst_74 [1] : vector<16x32xf32> to vector<16xf32>
    %183 = vector.shape_cast %182 : vector<16xf32> to vector<16x1xf32>
    %cst_75 = arith.constant 3.200000e+01 : f32
    %184 = vector.broadcast %cst_75 : f32 to vector<16x1xf32>
    %185 = arith.divf %183, %184 : vector<16x1xf32>
    %186 = vector.broadcast %185 : vector<16x1xf32> to vector<16x32xf32>
    %187 = arith.subf %177, %186 : vector<16x32xf32>
    %188 = arith.mulf %187, %187 : vector<16x32xf32>
    %cst_76 = arith.constant dense<0.000000e+00> : vector<16xf32>
    %189 = vector.multi_reduction <add>, %188, %cst_76 [1] : vector<16x32xf32> to vector<16xf32>
    %190 = vector.shape_cast %189 : vector<16xf32> to vector<16x1xf32>
    %cst_77 = arith.constant 3.200000e+01 : f32
    %191 = vector.broadcast %cst_77 : f32 to vector<16x1xf32>
    %192 = arith.divf %190, %191 : vector<16x1xf32>
    %193 = vector.broadcast %185 : vector<16x1xf32> to vector<16x32xf32>
    %194 = arith.subf %177, %193 : vector<16x32xf32>
    %cst_78 = arith.constant 9.99999974E-6 : f32
    %195 = vector.broadcast %cst_78 : f32 to vector<16x1xf32>
    %196 = arith.addf %192, %195 : vector<16x1xf32>
    %197 = math.rsqrt %196 : vector<16x1xf32>
    %198 = vector.broadcast %197 : vector<16x1xf32> to vector<16x32xf32>
    %199 = arith.mulf %194, %198 : vector<16x32xf32>
    %200 = vector.broadcast %179 : vector<1x32xf32> to vector<16x32xf32>
    %201 = arith.mulf %200, %199 : vector<16x32xf32>
    %202 = vector.broadcast %181 : vector<1x32xf32> to vector<16x32xf32>
    %203 = arith.addf %201, %202 : vector<16x32xf32>
    %204 = arith.truncf %203 : vector<16x32xf32> to vector<16x32xbf16>
    %c1_79 = arith.constant 1 : index
    %c0_80 = arith.constant 0 : index
    %c0_81 = arith.constant 0 : index
    %205 = vector.load %arg4[%c1_79, %c0_80, %c0_81] : memref<2x32x96xbf16, #tpu.memory_space<vmem>>, vector<1x32x96xbf16>
    %206 = vector.shape_cast %205 : vector<1x32x96xbf16> to vector<32x96xbf16>
    %cst_82 = arith.constant dense<0.000000e+00> : vector<16x96xf32>
    %207 = tpu.matmul %204, %206, %cst_82 {dimension_numbers = #tpu.dot_dimension_numbers<[1], [0], [0], [1], [0, 0, 1, 1], [], []>} : vector<16x32xbf16>, vector<32x96xbf16>, vector<16x96xf32> -> vector<16x96xf32>
    %208 = vector.extract_strided_slice %207 {offsets = [0, 0], sizes = [16, 8], strides = [1, 1]} : vector<16x96xf32> to vector<16x8xf32>
    %209 = arith.truncf %208 : vector<16x8xf32> to vector<16x8xbf16>
    %210 = vector.extract_strided_slice %207 {offsets = [0, 32], sizes = [16, 8], strides = [1, 1]} : vector<16x96xf32> to vector<16x8xf32>
    %211 = arith.truncf %210 : vector<16x8xf32> to vector<16x8xbf16>
    %212 = vector.extract_strided_slice %207 {offsets = [0, 64], sizes = [16, 8], strides = [1, 1]} : vector<16x96xf32> to vector<16x8xf32>
    %213 = arith.truncf %212 : vector<16x8xf32> to vector<16x8xbf16>
    %cst_83 = arith.constant dense<0.000000e+00> : vector<16x16xf32>
    %214 = tpu.matmul %209, %211, %cst_83 {dimension_numbers = #tpu.dot_dimension_numbers<[1], [1], [0], [0], [0, 0, 1, 0], [], []>} : vector<16x8xbf16>, vector<16x8xbf16>, vector<16x16xf32> -> vector<16x16xf32>
    %215 = arith.addf %214, %1 : vector<16x16xf32>
    %cst_84 = arith.constant dense<0xFF800000> : vector<16xf32>
    %216 = vector.multi_reduction <maximumf>, %215, %cst_84 [1] : vector<16x16xf32> to vector<16xf32>
    %217 = vector.shape_cast %216 : vector<16xf32> to vector<16x1xf32>
    %218 = vector.broadcast %217 : vector<16x1xf32> to vector<16x16xf32>
    %219 = arith.subf %215, %218 : vector<16x16xf32>
    %220 = math.exp %219 : vector<16x16xf32>
    %cst_85 = arith.constant dense<0.000000e+00> : vector<16xf32>
    %221 = vector.multi_reduction <add>, %220, %cst_85 [1] : vector<16x16xf32> to vector<16xf32>
    %222 = vector.shape_cast %221 : vector<16xf32> to vector<16x1xf32>
    %223 = tpu.reciprocal %222 {approx = true} : vector<16x1xf32> -> vector<16x1xf32>
    %224 = vector.broadcast %223 : vector<16x1xf32> to vector<16x16xf32>
    %225 = arith.mulf %220, %224 : vector<16x16xf32>
    %226 = arith.truncf %225 : vector<16x16xf32> to vector<16x16xbf16>
    %cst_86 = arith.constant dense<0.000000e+00> : vector<16x8xf32>
    %227 = tpu.matmul %226, %213, %cst_86 {dimension_numbers = #tpu.dot_dimension_numbers<[1], [0], [0], [1], [0, 0, 1, 1], [], []>} : vector<16x16xbf16>, vector<16x8xbf16>, vector<16x8xf32> -> vector<16x8xf32>
    %228 = vector.extract_strided_slice %207 {offsets = [0, 8], sizes = [16, 8], strides = [1, 1]} : vector<16x96xf32> to vector<16x8xf32>
    %229 = arith.truncf %228 : vector<16x8xf32> to vector<16x8xbf16>
    %230 = vector.extract_strided_slice %207 {offsets = [0, 40], sizes = [16, 8], strides = [1, 1]} : vector<16x96xf32> to vector<16x8xf32>
    %231 = arith.truncf %230 : vector<16x8xf32> to vector<16x8xbf16>
    %232 = vector.extract_strided_slice %207 {offsets = [0, 72], sizes = [16, 8], strides = [1, 1]} : vector<16x96xf32> to vector<16x8xf32>
    %233 = arith.truncf %232 : vector<16x8xf32> to vector<16x8xbf16>
    %cst_87 = arith.constant dense<0.000000e+00> : vector<16x16xf32>
    %234 = tpu.matmul %229, %231, %cst_87 {dimension_numbers = #tpu.dot_dimension_numbers<[1], [1], [0], [0], [0, 0, 1, 0], [], []>} : vector<16x8xbf16>, vector<16x8xbf16>, vector<16x16xf32> -> vector<16x16xf32>
    %235 = arith.addf %234, %1 : vector<16x16xf32>
    %cst_88 = arith.constant dense<0xFF800000> : vector<16xf32>
    %236 = vector.multi_reduction <maximumf>, %235, %cst_88 [1] : vector<16x16xf32> to vector<16xf32>
    %237 = vector.shape_cast %236 : vector<16xf32> to vector<16x1xf32>
    %238 = vector.broadcast %237 : vector<16x1xf32> to vector<16x16xf32>
    %239 = arith.subf %235, %238 : vector<16x16xf32>
    %240 = math.exp %239 : vector<16x16xf32>
    %cst_89 = arith.constant dense<0.000000e+00> : vector<16xf32>
    %241 = vector.multi_reduction <add>, %240, %cst_89 [1] : vector<16x16xf32> to vector<16xf32>
    %242 = vector.shape_cast %241 : vector<16xf32> to vector<16x1xf32>
    %243 = tpu.reciprocal %242 {approx = true} : vector<16x1xf32> -> vector<16x1xf32>
    %244 = vector.broadcast %243 : vector<16x1xf32> to vector<16x16xf32>
    %245 = arith.mulf %240, %244 : vector<16x16xf32>
    %246 = arith.truncf %245 : vector<16x16xf32> to vector<16x16xbf16>
    %cst_90 = arith.constant dense<0.000000e+00> : vector<16x8xf32>
    %247 = tpu.matmul %246, %233, %cst_90 {dimension_numbers = #tpu.dot_dimension_numbers<[1], [0], [0], [1], [0, 0, 1, 1], [], []>} : vector<16x16xbf16>, vector<16x8xbf16>, vector<16x8xf32> -> vector<16x8xf32>
    %248 = vector.extract_strided_slice %207 {offsets = [0, 16], sizes = [16, 8], strides = [1, 1]} : vector<16x96xf32> to vector<16x8xf32>
    %249 = arith.truncf %248 : vector<16x8xf32> to vector<16x8xbf16>
    %250 = vector.extract_strided_slice %207 {offsets = [0, 48], sizes = [16, 8], strides = [1, 1]} : vector<16x96xf32> to vector<16x8xf32>
    %251 = arith.truncf %250 : vector<16x8xf32> to vector<16x8xbf16>
    %252 = vector.extract_strided_slice %207 {offsets = [0, 80], sizes = [16, 8], strides = [1, 1]} : vector<16x96xf32> to vector<16x8xf32>
    %253 = arith.truncf %252 : vector<16x8xf32> to vector<16x8xbf16>
    %cst_91 = arith.constant dense<0.000000e+00> : vector<16x16xf32>
    %254 = tpu.matmul %249, %251, %cst_91 {dimension_numbers = #tpu.dot_dimension_numbers<[1], [1], [0], [0], [0, 0, 1, 0], [], []>} : vector<16x8xbf16>, vector<16x8xbf16>, vector<16x16xf32> -> vector<16x16xf32>
    %255 = arith.addf %254, %1 : vector<16x16xf32>
    %cst_92 = arith.constant dense<0xFF800000> : vector<16xf32>
    %256 = vector.multi_reduction <maximumf>, %255, %cst_92 [1] : vector<16x16xf32> to vector<16xf32>
    %257 = vector.shape_cast %256 : vector<16xf32> to vector<16x1xf32>
    %258 = vector.broadcast %257 : vector<16x1xf32> to vector<16x16xf32>
    %259 = arith.subf %255, %258 : vector<16x16xf32>
    %260 = math.exp %259 : vector<16x16xf32>
    %cst_93 = arith.constant dense<0.000000e+00> : vector<16xf32>
    %261 = vector.multi_reduction <add>, %260, %cst_93 [1] : vector<16x16xf32> to vector<16xf32>
    %262 = vector.shape_cast %261 : vector<16xf32> to vector<16x1xf32>
    %263 = tpu.reciprocal %262 {approx = true} : vector<16x1xf32> -> vector<16x1xf32>
    %264 = vector.broadcast %263 : vector<16x1xf32> to vector<16x16xf32>
    %265 = arith.mulf %260, %264 : vector<16x16xf32>
    %266 = arith.truncf %265 : vector<16x16xf32> to vector<16x16xbf16>
    %cst_94 = arith.constant dense<0.000000e+00> : vector<16x8xf32>
    %267 = tpu.matmul %266, %253, %cst_94 {dimension_numbers = #tpu.dot_dimension_numbers<[1], [0], [0], [1], [0, 0, 1, 1], [], []>} : vector<16x16xbf16>, vector<16x8xbf16>, vector<16x8xf32> -> vector<16x8xf32>
    %268 = vector.extract_strided_slice %207 {offsets = [0, 24], sizes = [16, 8], strides = [1, 1]} : vector<16x96xf32> to vector<16x8xf32>
    %269 = arith.truncf %268 : vector<16x8xf32> to vector<16x8xbf16>
    %270 = vector.extract_strided_slice %207 {offsets = [0, 56], sizes = [16, 8], strides = [1, 1]} : vector<16x96xf32> to vector<16x8xf32>
    %271 = arith.truncf %270 : vector<16x8xf32> to vector<16x8xbf16>
    %272 = vector.extract_strided_slice %207 {offsets = [0, 88], sizes = [16, 8], strides = [1, 1]} : vector<16x96xf32> to vector<16x8xf32>
    %273 = arith.truncf %272 : vector<16x8xf32> to vector<16x8xbf16>
    %cst_95 = arith.constant dense<0.000000e+00> : vector<16x16xf32>
    %274 = tpu.matmul %269, %271, %cst_95 {dimension_numbers = #tpu.dot_dimension_numbers<[1], [1], [0], [0], [0, 0, 1, 0], [], []>} : vector<16x8xbf16>, vector<16x8xbf16>, vector<16x16xf32> -> vector<16x16xf32>
    %275 = arith.addf %274, %1 : vector<16x16xf32>
    %cst_96 = arith.constant dense<0xFF800000> : vector<16xf32>
    %276 = vector.multi_reduction <maximumf>, %275, %cst_96 [1] : vector<16x16xf32> to vector<16xf32>
    %277 = vector.shape_cast %276 : vector<16xf32> to vector<16x1xf32>
    %278 = vector.broadcast %277 : vector<16x1xf32> to vector<16x16xf32>
    %279 = arith.subf %275, %278 : vector<16x16xf32>
    %280 = math.exp %279 : vector<16x16xf32>
    %cst_97 = arith.constant dense<0.000000e+00> : vector<16xf32>
    %281 = vector.multi_reduction <add>, %280, %cst_97 [1] : vector<16x16xf32> to vector<16xf32>
    %282 = vector.shape_cast %281 : vector<16xf32> to vector<16x1xf32>
    %283 = tpu.reciprocal %282 {approx = true} : vector<16x1xf32> -> vector<16x1xf32>
    %284 = vector.broadcast %283 : vector<16x1xf32> to vector<16x16xf32>
    %285 = arith.mulf %280, %284 : vector<16x16xf32>
    %286 = arith.truncf %285 : vector<16x16xf32> to vector<16x16xbf16>
    %cst_98 = arith.constant dense<0.000000e+00> : vector<16x8xf32>
    %287 = tpu.matmul %286, %273, %cst_98 {dimension_numbers = #tpu.dot_dimension_numbers<[1], [0], [0], [1], [0, 0, 1, 1], [], []>} : vector<16x16xbf16>, vector<16x8xbf16>, vector<16x8xf32> -> vector<16x8xf32>
    %288 = tpu.concatenate %227, %247, %267, %287 in 1 : vector<16x8xf32>, vector<16x8xf32>, vector<16x8xf32>, vector<16x8xf32> -> vector<16x32xf32>
    %289 = arith.truncf %288 : vector<16x32xf32> to vector<16x32xbf16>
    %c1_99 = arith.constant 1 : index
    %c0_100 = arith.constant 0 : index
    %c0_101 = arith.constant 0 : index
    %290 = vector.load %arg5[%c1_99, %c0_100, %c0_101] : memref<2x32x32xbf16, #tpu.memory_space<vmem>>, vector<1x32x32xbf16>
    %291 = vector.shape_cast %290 : vector<1x32x32xbf16> to vector<32x32xbf16>
    %cst_102 = arith.constant dense<0.000000e+00> : vector<16x32xf32>
    %292 = tpu.matmul %289, %291, %cst_102 {dimension_numbers = #tpu.dot_dimension_numbers<[1], [0], [0], [1], [0, 0, 1, 1], [], []>} : vector<16x32xbf16>, vector<32x32xbf16>, vector<16x32xf32> -> vector<16x32xf32>
    %293 = arith.addf %177, %292 : vector<16x32xf32>
    %c1_103 = arith.constant 1 : index
    %c0_104 = arith.constant 0 : index
    %c0_105 = arith.constant 0 : index
    %294 = vector.load %arg6[%c1_103, %c0_104, %c0_105] : memref<2x1x32xf32, #tpu.memory_space<vmem>>, vector<1x1x32xf32>
    %295 = vector.shape_cast %294 : vector<1x1x32xf32> to vector<1x32xf32>
    %296 = vector.broadcast %295 : vector<1x32xf32> to vector<16x32xf32>
    %297 = arith.addf %293, %296 : vector<16x32xf32>
    %c1_106 = arith.constant 1 : index
    %c0_107 = arith.constant 0 : index
    %c0_108 = arith.constant 0 : index
    %298 = vector.load %arg7[%c1_106, %c0_107, %c0_108] : memref<2x1x32xf32, #tpu.memory_space<vmem>>, vector<1x1x32xf32>
    %299 = vector.shape_cast %298 : vector<1x1x32xf32> to vector<1x32xf32>
    %c1_109 = arith.constant 1 : index
    %c0_110 = arith.constant 0 : index
    %c0_111 = arith.constant 0 : index
    %300 = vector.load %arg8[%c1_109, %c0_110, %c0_111] : memref<2x1x32xf32, #tpu.memory_space<vmem>>, vector<1x1x32xf32>
    %301 = vector.shape_cast %300 : vector<1x1x32xf32> to vector<1x32xf32>
    %cst_112 = arith.constant dense<0.000000e+00> : vector<16xf32>
    %302 = vector.multi_reduction <add>, %297, %cst_112 [1] : vector<16x32xf32> to vector<16xf32>
    %303 = vector.shape_cast %302 : vector<16xf32> to vector<16x1xf32>
    %cst_113 = arith.constant 3.200000e+01 : f32
    %304 = vector.broadcast %cst_113 : f32 to vector<16x1xf32>
    %305 = arith.divf %303, %304 : vector<16x1xf32>
    %306 = vector.broadcast %305 : vector<16x1xf32> to vector<16x32xf32>
    %307 = arith.subf %297, %306 : vector<16x32xf32>
    %308 = arith.mulf %307, %307 : vector<16x32xf32>
    %cst_114 = arith.constant dense<0.000000e+00> : vector<16xf32>
    %309 = vector.multi_reduction <add>, %308, %cst_114 [1] : vector<16x32xf32> to vector<16xf32>
    %310 = vector.shape_cast %309 : vector<16xf32> to vector<16x1xf32>
    %cst_115 = arith.constant 3.200000e+01 : f32
    %311 = vector.broadcast %cst_115 : f32 to vector<16x1xf32>
    %312 = arith.divf %310, %311 : vector<16x1xf32>
    %313 = vector.broadcast %305 : vector<16x1xf32> to vector<16x32xf32>
    %314 = arith.subf %297, %313 : vector<16x32xf32>
    %cst_116 = arith.constant 9.99999974E-6 : f32
    %315 = vector.broadcast %cst_116 : f32 to vector<16x1xf32>
    %316 = arith.addf %312, %315 : vector<16x1xf32>
    %317 = math.rsqrt %316 : vector<16x1xf32>
    %318 = vector.broadcast %317 : vector<16x1xf32> to vector<16x32xf32>
    %319 = arith.mulf %314, %318 : vector<16x32xf32>
    %320 = vector.broadcast %299 : vector<1x32xf32> to vector<16x32xf32>
    %321 = arith.mulf %320, %319 : vector<16x32xf32>
    %322 = vector.broadcast %301 : vector<1x32xf32> to vector<16x32xf32>
    %323 = arith.addf %321, %322 : vector<16x32xf32>
    %324 = arith.truncf %323 : vector<16x32xf32> to vector<16x32xbf16>
    %c1_117 = arith.constant 1 : index
    %c0_118 = arith.constant 0 : index
    %c0_119 = arith.constant 0 : index
    %325 = vector.load %arg9[%c1_117, %c0_118, %c0_119] : memref<2x32x128xbf16, #tpu.memory_space<vmem>>, vector<1x32x128xbf16>
    %326 = vector.shape_cast %325 : vector<1x32x128xbf16> to vector<32x128xbf16>
    %cst_120 = arith.constant dense<0.000000e+00> : vector<16x128xf32>
    %327 = tpu.matmul %324, %326, %cst_120 {dimension_numbers = #tpu.dot_dimension_numbers<[1], [0], [0], [1], [0, 0, 1, 1], [], []>} : vector<16x32xbf16>, vector<32x128xbf16>, vector<16x128xf32> -> vector<16x128xf32>
    %c1_121 = arith.constant 1 : index
    %c0_122 = arith.constant 0 : index
    %c0_123 = arith.constant 0 : index
    %328 = vector.load %arg10[%c1_121, %c0_122, %c0_123] : memref<2x1x128xf32, #tpu.memory_space<vmem>>, vector<1x1x128xf32>
    %329 = vector.shape_cast %328 : vector<1x1x128xf32> to vector<1x128xf32>
    %330 = vector.broadcast %329 : vector<1x128xf32> to vector<16x128xf32>
    %331 = arith.addf %327, %330 : vector<16x128xf32>
    %cst_124 = arith.constant 5.000000e-01 : f32
    %332 = vector.broadcast %cst_124 : f32 to vector<16x128xf32>
    %333 = arith.mulf %332, %331 : vector<16x128xf32>
    %cst_125 = arith.constant 4.471500e-02 : f32
    %334 = vector.broadcast %cst_125 : f32 to vector<16x128xf32>
    %335 = arith.mulf %334, %331 : vector<16x128xf32>
    %336 = arith.mulf %335, %331 : vector<16x128xf32>
    %337 = arith.mulf %336, %331 : vector<16x128xf32>
    %338 = arith.addf %331, %337 : vector<16x128xf32>
    %cst_126 = arith.constant 0.797884583 : f32
    %339 = vector.broadcast %cst_126 : f32 to vector<16x128xf32>
    %340 = arith.mulf %339, %338 : vector<16x128xf32>
    %341 = math.tanh %340 : vector<16x128xf32>
    %cst_127 = arith.constant 1.000000e+00 : f32
    %342 = vector.broadcast %cst_127 : f32 to vector<16x128xf32>
    %343 = arith.addf %342, %341 : vector<16x128xf32>
    %344 = arith.mulf %333, %343 : vector<16x128xf32>
    %345 = arith.truncf %344 : vector<16x128xf32> to vector<16x128xbf16>
    %c1_128 = arith.constant 1 : index
    %c0_129 = arith.constant 0 : index
    %c0_130 = arith.constant 0 : index
    %346 = vector.load %arg11[%c1_128, %c0_129, %c0_130] : memref<2x128x32xbf16, #tpu.memory_space<vmem>>, vector<1x128x32xbf16>
    %347 = vector.shape_cast %346 : vector<1x128x32xbf16> to vector<128x32xbf16>
    %cst_131 = arith.constant dense<0.000000e+00> : vector<16x32xf32>
    %348 = tpu.matmul %345, %347, %cst_131 {dimension_numbers = #tpu.dot_dimension_numbers<[1], [0], [0], [1], [0, 0, 1, 1], [], []>} : vector<16x128xbf16>, vector<128x32xbf16>, vector<16x32xf32> -> vector<16x32xf32>
    %c1_132 = arith.constant 1 : index
    %c0_133 = arith.constant 0 : index
    %c0_134 = arith.constant 0 : index
    %349 = vector.load %arg12[%c1_132, %c0_133, %c0_134] : memref<2x1x32xf32, #tpu.memory_space<vmem>>, vector<1x1x32xf32>
    %350 = vector.shape_cast %349 : vector<1x1x32xf32> to vector<1x32xf32>
    %351 = vector.broadcast %350 : vector<1x32xf32> to vector<16x32xf32>
    %352 = arith.addf %348, %351 : vector<16x32xf32>
    %353 = arith.addf %297, %352 : vector<16x32xf32>
    %c0_135 = arith.constant 0 : index
    %c0_136 = arith.constant 0 : index
    %354 = vector.load %arg13[%c0_135, %c0_136] : memref<1x32xf32, #tpu.memory_space<vmem>>, vector<1x32xf32>
    %c0_137 = arith.constant 0 : index
    %c0_138 = arith.constant 0 : index
    %355 = vector.load %arg14[%c0_137, %c0_138] : memref<1x32xf32, #tpu.memory_space<vmem>>, vector<1x32xf32>
    %cst_139 = arith.constant dense<0.000000e+00> : vector<16xf32>
    %356 = vector.multi_reduction <add>, %353, %cst_139 [1] : vector<16x32xf32> to vector<16xf32>
    %357 = vector.shape_cast %356 : vector<16xf32> to vector<16x1xf32>
    %cst_140 = arith.constant 3.200000e+01 : f32
    %358 = vector.broadcast %cst_140 : f32 to vector<16x1xf32>
    %359 = arith.divf %357, %358 : vector<16x1xf32>
    %360 = vector.broadcast %359 : vector<16x1xf32> to vector<16x32xf32>
    %361 = arith.subf %353, %360 : vector<16x32xf32>
    %362 = arith.mulf %361, %361 : vector<16x32xf32>
    %cst_141 = arith.constant dense<0.000000e+00> : vector<16xf32>
    %363 = vector.multi_reduction <add>, %362, %cst_141 [1] : vector<16x32xf32> to vector<16xf32>
    %364 = vector.shape_cast %363 : vector<16xf32> to vector<16x1xf32>
    %cst_142 = arith.constant 3.200000e+01 : f32
    %365 = vector.broadcast %cst_142 : f32 to vector<16x1xf32>
    %366 = arith.divf %364, %365 : vector<16x1xf32>
    %367 = vector.broadcast %359 : vector<16x1xf32> to vector<16x32xf32>
    %368 = arith.subf %353, %367 : vector<16x32xf32>
    %cst_143 = arith.constant 9.99999974E-6 : f32
    %369 = vector.broadcast %cst_143 : f32 to vector<16x1xf32>
    %370 = arith.addf %366, %369 : vector<16x1xf32>
    %371 = math.rsqrt %370 : vector<16x1xf32>
    %372 = vector.broadcast %371 : vector<16x1xf32> to vector<16x32xf32>
    %373 = arith.mulf %368, %372 : vector<16x32xf32>
    %374 = vector.broadcast %354 : vector<1x32xf32> to vector<16x32xf32>
    %375 = arith.mulf %374, %373 : vector<16x32xf32>
    %376 = vector.broadcast %355 : vector<1x32xf32> to vector<16x32xf32>
    %377 = arith.addf %375, %376 : vector<16x32xf32>
    %378 = arith.truncf %377 : vector<16x32xf32> to vector<16x32xbf16>
    %c0_144 = arith.constant 0 : index
    %c0_145 = arith.constant 0 : index
    %379 = vector.load %arg15[%c0_144, %c0_145] : memref<32x256xbf16, #tpu.memory_space<vmem>>, vector<32x256xbf16>
    %cst_146 = arith.constant dense<0.000000e+00> : vector<16x256xf32>
    %380 = tpu.matmul %378, %379, %cst_146 {dimension_numbers = #tpu.dot_dimension_numbers<[1], [0], [0], [1], [0, 0, 1, 1], [], []>} : vector<16x32xbf16>, vector<32x256xbf16>, vector<16x256xf32> -> vector<16x256xf32>
    %c0_147 = arith.constant 0 : index
    %c0_148 = arith.constant 0 : index
    %381 = vector.load %arg16[%c0_147, %c0_148] : memref<16x256xf32, #tpu.memory_space<vmem>>, vector<16x256xf32>
    tpu.vector_store %arg16[%c0_147, %c0_148], %380 {strides = array<i32>} : memref<16x256xf32, #tpu.memory_space<vmem>>, vector<16x256xf32>,
    return
  }
}

</mosaic_0001>

<bundles_post_ra>
// kernel: forward.1
= control target key start
LH: loop header
LB: loop body
LE: loop exit
PB: predicated region body
PF: predicated region fallthrough
CT: control target
= control target key end

     0   :  { %s2465_s0 = inlined_call_operand.vmem [shape: f32[16,32], index: 0, kind: input, shape index: {}]   ;;  %s2466_s1 = inlined_call_operand.vmem [shape: f32[16,16], index: 1, kind: input, shape index: {}]   ;;  %s2467_s2 = inlined_call_operand.vmem [shape: f32[2,1,32], index: 2, kind: input, shape index: {}, may-alias: {2,7}]   ;;  %s2468_s3 = inlined_call_operand.vmem [shape: f32[2,1,32], index: 3, kind: input, shape index: {}, may-alias: {3,6,8,12}]   ;;  %s2469_s4 = inlined_call_operand.hbm [shape: bf16[2,32,96], index: 4, kind: input, shape index: {}]   ;;  %s2470_s5 = inlined_call_operand.hbm [shape: bf16[2,32,32], index: 5, kind: input, shape index: {}]   ;;  %s2471_s6 = inlined_call_operand.vmem [shape: f32[2,1,32], index: 6, kind: input, shape index: {}, may-alias: {3,6,8,12}]   ;;  %s2472_s7 = inlined_call_operand.vmem [shape: f32[2,1,32], index: 7, kind: input, shape index: {}, may-alias: {2,7}]   ;;  %s2473_s8 = inlined_call_operand.vmem [shape: f32[2,1,32], index: 8, kind: input, shape index: {}, may-alias: {3,6,8,12}]   ;;  %s2474_s9 = inlined_call_operand.vmem [shape: bf16[2,32,128], index: 9, kind: input, shape index: {}]   ;;  %s2475_s10 = inlined_call_operand.vmem [shape: f32[2,1,128], index: 10, kind: input, shape index: {}]   ;;  %s2476_s11 = inlined_call_operand.vmem [shape: bf16[2,128,32], index: 11, kind: input, shape index: {}]   ;;  %s2477_s12 = inlined_call_operand.vmem [shape: f32[2,1,32], index: 12, kind: input, shape index: {}, may-alias: {3,6,8,12}]   ;;  %s2478_s13 = inlined_call_operand.vmem [shape: f32[1,32], index: 13, kind: input, shape index: {}]   ;;  %s2479_s14 = inlined_call_operand.vmem [shape: f32[1,32], index: 14, kind: input, shape index: {}]   ;;  %s2480_s15 = inlined_call_operand.vmem [shape: bf16[32,256], index: 15, kind: input, shape index: {}]   ;;  %s2481_s16 = inlined_call_operand.hbm [shape: f32[16,256], index: 16, kind: output, shape index: {}]  }
   0x1   :  { %2490 = sst [smem:[#allocation11_spill]] %s2465_s0 }
   0x2   :  { %21 = vsyncpa [#allocation3], 0 }
   0x3   :  { %22 = vsyncpa [#allocation6], 0 }
   0x4   :  { %23 = vsyncpa [#allocation4], 0  ;;  %s36_s23 = sshll.u32 %s2469_s4, 4  ;;  %s1952_s24 = smov [#allocation2]   ;;  %s37_s23 = int_to_ptr.hbm [resolvable:$true] %s36_s23 }
   0x5   :  { %s38_s25 = sshll.u32 %s1952_s24, 4  ;;  %s49_s28 = sshll.u32 %s2470_s5, 4  ;;  %s39_s25 = int_to_ptr.vmem [resolvable:$true] %s38_s25  ;;  %s50_s28 = int_to_ptr.hbm [resolvable:$true] %s49_s28 }
   0x6   :  { %s1953_s29 = smov 64   ;;  %s1954_s30 = smov 4  }
   0x7   :  { %44 = dma.hbm_to_vmem [thread:$0]  %s37_s23, 512, %s39_s25, [#allocation3], %s1953_s29, %s1953_s29, %s1954_s30  }
   0x8   :  { %s1955_s0 = smov [#allocation5]  }
   0x9   :  { %s51_s17 = sshll.u32 %s1955_s0, 4  ;;  %s52_s17 = int_to_ptr.vmem [resolvable:$true] %s51_s17 }
   0xa   :  { %57 = dma.hbm_to_vmem [thread:$0]  %s50_s28, 512, %s52_s17, [#allocation6], %s1953_s29, %s1953_s29, %s1954_s30  }
   0xb   :  { %1946 = dma.done.wait [#allocation3], 512  }
   0xc   :  { %1947 = vsyncadd [#allocation3], 4294966784 }
   0xd   :  { %1948 = dma.done.wait [#allocation6], 512  }
   0xe   :  { %1949 = vsyncadd [#allocation6], 4294966784  ;;  %vm93_vm0 = vcmask 261120   ;;  %s2491_s5 = sld [smem:[#allocation11_spill]]  ;;  %v1956_v4 = vmov 32.0   ;;  %v1683_v21 = vld [vmem:[#allocation2 + $0x8] sm:$0xff] }
   0xf   :  { %1780 = vrcp.f32 %v1956_v4  ;;  %181 = vmatpush.bf16.msra.mxu0 %v1683_v21  ;;  %v1682_v23 = vld [vmem:[#allocation2] sm:$0xff]  ;;  %s1957_s25 = smov 96   ;;  %vm193_vm8 = vcmask 64512   ;;  %vm214_vm9 = vcmask 130048   ;;  %v2117_v62 = vld [vmem:[%s2466_s1 + $0x8] sm:$0xff]  ;;  %s1958_s0 = smov 72  }
  0x10   :  { %v1764_v42 = vld [vmem:[%s2467_s2] ss:$0 sm:$0xff]  ;;  %s1960_s17 = smov 88   ;;  %s1961_s4 = smov 80   ;;  %vm487_vm10 = vcmask 195584  }
  0x11   :  { %v1765_v47 = vld [vmem:[%s2468_s3] ss:$0 sm:$0xff]  ;;  %s1962_s18 = smov 104   ;;  %s2489_s19 = smov 56  }
  0x12   :  { %v2110_v58 = vld [vmem:[%s2466_s1] sm:$0xff]  ;;  %s1959_s1 = smov 120   ;;  %s2487_s20 = smov 40  }
  0x13   :  { %182 = vmatpush.bf16.msra.mxu0 %v1682_v23  ;;  %s2488_s21 = smov 48   ;;  %s2486_s22 = smov 8  }
  0x14   :  { %v2070_v0 = vld [vmem:[%s2491_s5] sm:$0xff]  ;;  %v2077_v2 = vld [vmem:[%s2491_s5 + $0x8] sm:$0xff]  ;;  %s1963_s5 = smov 112   ;;  %s2483_s23 = smov 16  }
  0x15   :  { %v94_v1 = vsel %vm93_vm0, %v2070_v0, 0.0  ;;  %v97_v3 = vsel %vm93_vm0, %v2077_v2, 0.0  ;;  %v1781_v5 = vpop.eup %1780  ;;  %s2485_s24 = smov 24  }
  0x16   :  { %95 = vadd.xlane.f32.xlu0 %v94_v1  ;;  %v101_v6 = vmul.f32 32.0, %v1781_v5  ;;  %vm105_vm1 = vweird.f32 %v1781_v5 }
  0x18   :  { %v102_v7 = vsub.f32 1.0, %v101_v6 }
  0x1a   :  { %v103_v8 = vmul.f32 %v1781_v5, %v102_v7 }
  0x1c   :  { %v104_v9 = vadd.f32 %v1781_v5, %v103_v8 }
  0x1e   :  { %98 = vadd.xlane.f32.xlu0 %v97_v3  ;;  %v2081_v10 = vsel %vm105_vm1, %v1781_v5, %v104_v9 }
  0x89   :  { %v96_v11 = vpop.xlane.xlu0 %95 }
  0x8a   :  { %v107_v12 = vmul.f32 %v2081_v10, %v96_v11 }
  0x8c   :  { %v109_v13 = vsub.f32 %v2070_v0, %v107_v12 }
  0x8e   :  { %v111_v14 = vmul.f32 %v109_v13, %v109_v13 }
  0x90   :  { %v113_v15 = vsel %vm93_vm0, %v111_v14, 0.0 }
  0x91   :  { %114 = vadd.xlane.f32.xlu1 %v113_v15  ;;  %v99_v16 = vpop.xlane.xlu0 %98 }
  0x92   :  { %v108_v17 = vmul.f32 %v2081_v10, %v99_v16 }
  0x94   :  { %v110_v18 = vsub.f32 %v2077_v2, %v108_v17 }
  0x96   :  { %v112_v19 = vmul.f32 %v110_v18, %v110_v18 }
  0x98   :  { %v116_v20 = vsel %vm93_vm0, %v112_v19, 0.0 }
  0x99   :  { %117 = vadd.xlane.f32.xlu1 %v116_v20 }
 0x104   :  { %v115_v22 = vpop.xlane.xlu1 %114 }
 0x105   :  { %v119_v24 = vmul.f32 %v115_v22, %v2081_v10 }
 0x107   :  { %v121_v25 = vadd.f32 1e-05, %v119_v24 }
 0x109   :  { %1782 = vrsqrt.f32 %v121_v25  ;;  %vm129_vm3 = vweird.f32 %v121_v25 }
 0x10c   :  { %v118_v26 = vpop.xlane.xlu1 %117 }
 0x10d   :  { %v120_v27 = vmul.f32 %v118_v26, %v2081_v10 }
 0x10f   :  { %v1783_v28 = vpop.eup %1782  ;;  %v122_v29 = vadd.f32 1e-05, %v120_v27 }
 0x110   :  { %v124_v30 = vmul.f32 %v1783_v28, %v121_v25  ;;  %vm130_vm2 = vweird.f32 %v1783_v28 }
 0x111   :  { %1784 = vrsqrt.f32 %v122_v29  ;;  %vm131_vm4 = vmor %vm129_vm3, %vm130_vm2  ;;  %vm139_vm6 = vweird.f32 %v122_v29 }
 0x112   :  { %v125_v31 = vmul.f32 %v1783_v28, %v124_v30 }
 0x114   :  { %v126_v32 = vmul.f32 0.5, %v125_v31 }
 0x116   :  { %v127_v33 = vsub.f32 1.5, %v126_v32 }
 0x117   :  { %v1785_v34 = vpop.eup %1784 }
 0x118   :  { %v128_v35 = vmul.f32 %v1783_v28, %v127_v33  ;;  %v134_v36 = vmul.f32 %v1785_v34, %v122_v29  ;;  %vm140_vm5 = vweird.f32 %v1785_v34 }
 0x119   :  { %vm141_vm7 = vmor %vm139_vm6, %vm140_vm5 }
 0x11a   :  { %v135_v37 = vmul.f32 %v1785_v34, %v134_v36  ;;  %v132_v38 = vsel %vm131_vm4, %v1783_v28, %v128_v35 }
 0x11b   :  { %v143_v41 = vmul.f32 %v132_v38, %v109_v13 }
 0x11c   :  { %v136_v39 = vmul.f32 0.5, %v135_v37 }
 0x11d   :  { %v148_v46 = vmul.f32 %v1764_v42, %v143_v41 }
 0x11e   :  { %v137_v40 = vsub.f32 1.5, %v136_v39 }
 0x11f   :  { %v153_v49 = vadd.f32 %v1765_v47, %v148_v46 }
 0x120   :  { %v138_v43 = vmul.f32 %v1785_v34, %v137_v40 }
 0x122   :  { %v142_v44 = vsel %vm141_vm7, %v1785_v34, %v138_v43 }
 0x123   :  { %v144_v45 = vmul.f32 %v142_v44, %v110_v18 }
 0x125   :  { %v149_v48 = vmul.f32 %v1764_v42, %v144_v45 }
 0x127   :  { %v154_v50 = vadd.f32 %v1765_v47, %v149_v48 }
 0x129   :  { %v155_v51 = vpack.c.bf16 %v154_v50, %v153_v49 }
 0x12b   :  { %1511 = vmatmul.msk.bf16.vlgmr.msra.gmra.mxu0 %vm93_vm0, %v155_v51 }
 0x1a8   :  { %v184_v52 = vpop.f32.mrf.mxu0 }
 0x1b0   :  { %v186_v53 = vpop.f32.mrf.mxu0 }
 0x1b1   :  { %v2098_v54 = vpack.c.bf16 %v186_v53, %v184_v52 }
 0x1b3   :  { %238 = vrot.lane.b32.xlu1 %v2098_v54, %s1953_s29  ;;  %191 = vrot.lane.b32.xlu2 %v2098_v54, %s1957_s25 }
 0x20d   :  { %v192_v55 = vpop.permute.xlu2 %191 }
 0x20e   :  { %v198_v56 = vsel %vm193_vm8, %v192_v55, 0 }
 0x20f   :  { %207 = vmatpush.bf16.xpose.msra.mxu1 %v198_v56 }
 0x216   :  { %1512 = vmatmul.msk.bf16.vlgmr.msra.gmra.mxu1 %vm193_vm8, %v2098_v54 }
 0x225   :  { %v239_v57 = vpop.permute.xlu1 %238 }
 0x226   :  { %251 = vmatpush.bf16.msra.mxu3 %v239_v57 }
 0x293   :  { %v209_v59 = vpop.f32.mrf.mxu1 }
 0x294   :  { %v210_v60 = vadd.f32 %v209_v59, %v2110_v58 }
 0x296   :  { %v215_v61 = vsel %vm214_vm9, %v210_v60, -inf }
 0x297   :  { %216 = vmax.xlane.f32.xlu2 %v215_v61 }
 0x29b   :  { %v211_v63 = vpop.f32.mrf.mxu1 }
 0x29c   :  { %v212_v1 = vadd.f32 %v211_v63, %v2117_v62 }
 0x29e   :  { %v218_v3 = vsel %vm214_vm9, %v212_v1, -inf }
 0x29f   :  { %219 = vmax.xlane.f32.xlu0 %v218_v3 }
 0x2af   :  { %394 = vrot.lane.b32.xlu2 %v2098_v54, %s1958_s0 }
 0x30a   :  { %v217_v4 = vpop.xlane.xlu2 %216 }
 0x30b   :  { %v221_v5 = vsub.f32 %v210_v60, %v217_v4 }
 0x30d   :  { %v223_v6 = vmul.f32 1.442695, %v221_v5 }
 0x30f   :  { %1786 = vpow2.f32 %v223_v6 }
 0x312   :  { %v220_v7 = vpop.xlane.xlu0 %219  ;;  %v395_v23 = vpop.permute.xlu2 %394 }
 0x313   :  { %v222_v8 = vsub.f32 %v212_v1, %v220_v7  ;;  %v400_v26 = vsel %vm193_vm8, %v395_v23, 0 }
 0x315   :  { %v1787_v9 = vpop.eup %1786  ;;  %v225_v11 = vmul.f32 1.442695, %v222_v8 }
 0x316   :  { %v227_v12 = vsel %vm214_vm9, %v1787_v9, 0.0 }
 0x317   :  { %1788 = vpow2.f32 %v225_v11  ;;  %228 = vadd.xlane.f32.xlu1 %v227_v12 }
 0x31d   :  { %v1789_v13 = vpop.eup %1788 }
 0x31e   :  { %v230_v14 = vsel %vm214_vm9, %v1789_v13, 0.0 }
 0x31f   :  { %231 = vadd.xlane.f32.xlu0 %v230_v14 }
 0x330   :  { %258 = vrot.lane.b32.xlu1 %v2098_v54, %s1959_s1 }
 0x333   :  { %260 = vrot.lane.b32.xlu0 %v2098_v54, %s1960_s17 }
 0x338   :  { %327 = vrot.lane.b32.xlu1 %v2098_v54, %s1961_s4 }
 0x33b   :  { %392 = vrot.lane.b32.xlu0 %v2098_v54, %s1962_s18 }
 0x343   :  { %325 = vrot.lane.b32.xlu0 %v2098_v54, %s1963_s5 }
 0x38a   :  { %v229_v15 = vpop.xlane.xlu1 %228 }
 0x38b   :  { %1790 = vrcp.f32 %v229_v15 }
 0x391   :  { %v1791_v17 = vpop.eup %1790 }
 0x392   :  { %v232_v16 = vpop.xlane.xlu0 %231  ;;  %v235_v19 = vmul.f32 %v1791_v17, %v1787_v9 }
 0x393   :  { %1792 = vrcp.f32 %v232_v16 }
 0x399   :  { %v1793_v18 = vpop.eup %1792 }
 0x39a   :  { %v236_v20 = vmul.f32 %v1793_v18, %v1789_v13 }
 0x39c   :  { %v237_v21 = vpack.c.bf16 %v236_v20, %v235_v19 }
 0x39e   :  { %1513 = vmatmul.msk.bf16.vlgmr.msra.gmra.mxu3 %vm214_vm9, %v237_v21 }
 0x3a2   :  { %v259_v22 = vpop.permute.xlu1 %258 }
 0x3a5   :  { %v261_v24 = vpop.permute.xlu0 %260 }
 0x3a6   :  { %v266_v25 = vsel %vm193_vm8, %v261_v24, 0 }
 0x3a7   :  { %275 = vmatpush.bf16.xpose.msrb.mxu3 %v266_v25 }
 0x3aa   :  { %v328_v27 = vpop.permute.xlu1 %327 }
 0x3ab   :  { %v333_v28 = vsel %vm193_vm8, %v328_v27, 0 }
 0x3ac   :  { %342 = vmatpush.bf16.xpose.msrb.mxu0 %v333_v28 }
 0x3ad   :  { %v393_v29 = vpop.permute.xlu0 %392 }
 0x3ae   :  { %1514 = vmatmul.msk.bf16.vlgmr.msrb.gmra.mxu3 %vm193_vm8, %v259_v22 }
 0x3af   :  { %409 = vmatpush.bf16.xpose.msra.mxu3 %v400_v26 }
 0x3b5   :  { %v326_v30 = vpop.permute.xlu0 %325 }
 0x3b6   :  { %1516 = vmatmul.msk.bf16.vlgmr.msrb.gmra.mxu0 %vm193_vm8, %v326_v30 }
 0x3be   :  { %1518 = vmatmul.msk.bf16.vlgmr.msra.gmra.mxu3 %vm193_vm8, %v393_v29 }
 0x421   :  { %v2142_v31 = vpop.f32.mrf.mxu3 }
 0x429   :  { %v2144_v32 = vpop.f32.mrf.mxu3 }
 0x431   :  { %v277_v33 = vpop.f32.mrf.mxu3 }
 0x432   :  { %v278_v34 = vadd.f32 %v277_v33, %v2110_v58 }
 0x433   :  { %v344_v38 = vpop.f32.mrf.mxu0 }
 0x434   :  { %v282_v35 = vsel %vm214_vm9, %v278_v34, -inf  ;;  %v345_v40 = vadd.f32 %v344_v38, %v2110_v58 }
 0x435   :  { %283 = vmax.xlane.f32.xlu1 %v282_v35 }
 0x436   :  { %v349_v43 = vsel %vm214_vm9, %v345_v40, -inf }
 0x439   :  { %v279_v36 = vpop.f32.mrf.mxu3 }
 0x43a   :  { %v280_v37 = vadd.f32 %v279_v36, %v2117_v62 }
 0x43b   :  { %v346_v45 = vpop.f32.mrf.mxu0 }
 0x43c   :  { %v285_v39 = vsel %vm214_vm9, %v280_v37, -inf  ;;  %v347_v46 = vadd.f32 %v346_v45, %v2117_v62 }
 0x43d   :  { %286 = vmax.xlane.f32.xlu0 %v285_v39 }
 0x43e   :  { %v352_v50 = vsel %vm214_vm9, %v347_v46, -inf }
 0x441   :  { %v411_v41 = vpop.f32.mrf.mxu3 }
 0x442   :  { %v412_v42 = vadd.f32 %v411_v41, %v2110_v58 }
 0x444   :  { %v416_v44 = vsel %vm214_vm9, %v412_v42, -inf }
 0x445   :  { %350 = vmax.xlane.f32.xlu0 %v349_v43  ;;  %417 = vmax.xlane.f32.xlu2 %v416_v44 }
 0x449   :  { %v413_v47 = vpop.f32.mrf.mxu3 }
 0x44a   :  { %v414_v48 = vadd.f32 %v413_v47, %v2117_v62 }
 0x44c   :  { %v419_v49 = vsel %vm214_vm9, %v414_v48, -inf }
 0x44d   :  { %420 = vmax.xlane.f32.xlu1 %v419_v49  ;;  %353 = vmax.xlane.f32.xlu2 %v352_v50 }
 0x465   :  { %305 = vrot.lane.b32.xlu2 %v2098_v54, %s2489_s19 }
 0x4a8   :  { %v284_v52 = vpop.xlane.xlu1 %283 }
 0x4a9   :  { %v288_v57 = vsub.f32 %v278_v34, %v284_v52 }
 0x4ab   :  { %v290_v60 = vmul.f32 1.442695, %v288_v57 }
 0x4b0   :  { %v287_v51 = vpop.xlane.xlu0 %286 }
 0x4b1   :  { %v289_v5 = vsub.f32 %v280_v37, %v287_v51 }
 0x4b3   :  { %v292_v8 = vmul.f32 1.442695, %v289_v5 }
 0x4b8   :  { %v351_v53 = vpop.xlane.xlu0 %350  ;;  %v418_v55 = vpop.xlane.xlu2 %417 }
 0x4b9   :  { %v355_v56 = vsub.f32 %v345_v40, %v351_v53  ;;  %v422_v3 = vsub.f32 %v412_v42, %v418_v55 }
 0x4bb   :  { %v357_v59 = vmul.f32 1.442695, %v355_v56  ;;  %v424_v7 = vmul.f32 1.442695, %v422_v3 }
 0x4bd   :  { %1794 = vpow2.f32 %v357_v59  ;;  %v1685_v59 = vld [vmem:[#allocation5 + $0x8] sm:$0xff] }
 0x4be   :  { %1796 = vpow2.f32 %v290_v60  ;;  %516 = vmatpush.bf16.msra.mxu0 %v1685_v59  ;;  %v1684_v60 = vld [vmem:[#allocation5] sm:$0xff] }
 0x4bf   :  { %v1768_v59 = vld [vmem:[%s2473_s8] ss:$0 sm:$0xff] }
 0x4c0   :  { %v354_v61 = vpop.xlane.xlu2 %353  ;;  %v421_v12 = vpop.xlane.xlu1 %420 }
 0x4c1   :  { %v356_v63 = vsub.f32 %v347_v46, %v354_v61  ;;  %v423_v14 = vsub.f32 %v414_v48, %v421_v12 }
 0x4c2   :  { %517 = vmatpush.bf16.msra.mxu0 %v1684_v60 }
 0x4c3   :  { %v2160_v1 = vpop.eup %1794  ;;  %v359_v4 = vmul.f32 1.442695, %v356_v63  ;;  %v426_v17 = vmul.f32 1.442695, %v423_v14 }
 0x4c4   :  { %v361_v6 = vsel %vm214_vm9, %v2160_v1, 0.0  ;;  %v1797_v11 = vpop.eup %1796 }
 0x4c5   :  { %362 = vadd.xlane.f32.xlu1 %v361_v6  ;;  %1798 = vpow2.f32 %v359_v4  ;;  %v294_v15 = vsel %vm214_vm9, %v1797_v11, 0.0 }
 0x4c6   :  { %1800 = vpow2.f32 %v424_v7 }
 0x4c7   :  { %1802 = vpow2.f32 %v292_v8 }
 0x4c8   :  { %v306_v9 = vpop.permute.xlu2 %305  ;;  %1804 = vpow2.f32 %v426_v17 }
 0x4c9   :  { %318 = vmatpush.bf16.msra.mxu2 %v306_v9 }
 0x4cb   :  { %v1799_v13 = vpop.eup %1798 }
 0x4cc   :  { %v364_v16 = vsel %vm214_vm9, %v1799_v13, 0.0  ;;  %v1801_v18 = vpop.eup %1800 }
 0x4cd   :  { %295 = vadd.xlane.f32.xlu1 %v294_v15  ;;  %365 = vadd.xlane.f32.xlu0 %v364_v16  ;;  %v1803_v19 = vpop.eup %1802  ;;  %v428_v20 = vsel %vm214_vm9, %v1801_v18, 0.0 }
 0x4ce   :  { %v297_v21 = vsel %vm214_vm9, %v1803_v19, 0.0  ;;  %v1805_v22 = vpop.eup %1804 }
 0x4cf   :  { %v431_v23 = vsel %vm214_vm9, %v1805_v22, 0.0 }
 0x4d5   :  { %429 = vadd.xlane.f32.xlu1 %v428_v20  ;;  %298 = vadd.xlane.f32.xlu0 %v297_v21 }
 0x4dd   :  { %432 = vadd.xlane.f32.xlu0 %v431_v23 }
 0x4ee   :  { %439 = vrot.lane.b32.xlu1 %v2098_v54, %s2487_s20 }
 0x4f1   :  { %372 = vrot.lane.b32.xlu0 %v2098_v54, %s2488_s21 }
 0x538   :  { %v363_v24 = vpop.xlane.xlu1 %362 }
 0x540   :  { %v366_v25 = vpop.xlane.xlu0 %365  ;;  %v296_v26 = vpop.xlane.xlu1 %295 }
 0x541   :  { %1806 = vrcp.f32 %v296_v26 }
 0x547   :  { %v1807_v28 = vpop.eup %1806 }
 0x548   :  { %v299_v27 = vpop.xlane.xlu0 %298  ;;  %v302_v30 = vmul.f32 %v1807_v28, %v1797_v11  ;;  %v430_v36 = vpop.xlane.xlu1 %429 }
 0x549   :  { %1808 = vrcp.f32 %v299_v27 }
 0x54f   :  { %v1809_v29 = vpop.eup %1808 }
 0x550   :  { %v303_v33 = vmul.f32 %v1809_v29, %v1803_v19  ;;  %v433_v34 = vpop.xlane.xlu0 %432 }
 0x551   :  { %1810 = vrcp.f32 %v433_v34  ;;  %v1687_v34 = vld [vmem:[%s2474_s9 + $0x8] sm:$0xff] }
 0x552   :  { %v304_v35 = vpack.c.bf16 %v303_v33, %v302_v30  ;;  %1812 = vrcp.f32 %v430_v36 }
 0x553   :  { %1814 = vrcp.f32 %v366_v25 }
 0x554   :  { %1515 = vmatmul.msk.bf16.vlgmr.msra.gmra.mxu2 %vm214_vm9, %v304_v35  ;;  %1816 = vrcp.f32 %v363_v24 }
 0x557   :  { %v1811_v54 = vpop.eup %1810 }
 0x558   :  { %v1813_v37 = vpop.eup %1812  ;;  %v437_v39 = vmul.f32 %v1811_v54, %v1805_v22  ;;  %v1686_v54 = vld [vmem:[%s2474_s9] sm:$0xff] }
 0x559   :  { %v1815_v38 = vpop.eup %1814  ;;  %v436_v42 = vmul.f32 %v1813_v37, %v1801_v18 }
 0x55a   :  { %v1817_v41 = vpop.eup %1816  ;;  %v370_v43 = vmul.f32 %v1815_v38, %v1799_v13 }
 0x55b   :  { %v438_v44 = vpack.c.bf16 %v437_v39, %v436_v42  ;;  %v369_v45 = vmul.f32 %v1817_v41, %v2160_v1 }
 0x55d   :  { %v371_v47 = vpack.c.bf16 %v370_v43, %v369_v45 }
 0x560   :  { %v440_v40 = vpop.permute.xlu1 %439 }
 0x561   :  { %452 = vmatpush.bf16.msrb.mxu2 %v440_v40 }
 0x563   :  { %v373_v46 = vpop.permute.xlu0 %372 }
 0x564   :  { %385 = vmatpush.bf16.msrb.mxu1 %v373_v46  ;;  %1519 = vmatmul.msk.bf16.vlgmr.msrb.gmra.mxu2 %vm214_vm9, %v438_v44 }
 0x567   :  { %1517 = vmatmul.msk.bf16.vlgmr.msrb.gmra.mxu1 %vm214_vm9, %v371_v47 }
 0x568   :  { %618 = vmatpush.bf16.msra.mxu1 %v1687_v34 }
 0x56c   :  { %619 = vmatpush.bf16.msra.mxu1 %v1686_v54 }
 0x5d7   :  { %v320_v48 = vpop.f32.mrf.mxu2 }
 0x5df   :  { %v322_v49 = vpop.f32.mrf.mxu2 }
 0x5e0   :  { %v1734_v50 = vpack.i.bf16 %v322_v49, %v320_v48 }
 0x5e2   :  { %1735 = vrot.lane.b32.xlu2 %v1734_v50, %s2486_s22 }
 0x5e4   :  { %v387_v51 = vpop.f32.mrf.mxu1 }
 0x5e7   :  { %v454_v52 = vpop.f32.mrf.mxu2 }
 0x5ec   :  { %v389_v53 = vpop.f32.mrf.mxu1 }
 0x5ed   :  { %v1739_v55 = vpack.i.bf16 %v389_v53, %v387_v51  ;;  %v1767_v53 = vld [vmem:[%s2472_s7] ss:$0 sm:$0xff] }
 0x5ef   :  { %1740 = vrot.lane.b32.xlu2 %v1739_v55, %s2483_s23  ;;  %v456_v56 = vpop.f32.mrf.mxu2 }
 0x5f0   :  { %v1744_v57 = vpack.i.bf16 %v456_v56, %v454_v52 }
 0x5f2   :  { %1745 = vrot.lane.b32.xlu0 %v1744_v57, %s2485_s24 }
 0x63c   :  { %v1736_v61 = vpop.permute.xlu2 %1735 }
 0x63d   :  { %v1738_v1 = vunpack.i.h.bf16 %v1736_v61  ;;  %v1737_v3 = vunpack.i.l.bf16 %v1736_v61 }
 0x63f   :  { %v484_v7 = vsel %vm193_vm8, %v2144_v32, %v1738_v1  ;;  %v483_v8 = vsel %vm193_vm8, %v2142_v31, %v1737_v3  ;;  %v1766_v32 = vld [vmem:[%s2471_s6] ss:$0 sm:$0xff] }
 0x649   :  { %v1741_v63 = vpop.permute.xlu2 %1740 }
 0x64a   :  { %v1743_v4 = vunpack.i.h.bf16 %v1741_v63  ;;  %v1742_v5 = vunpack.i.l.bf16 %v1741_v63 }
 0x64c   :  { %v485_v12 = vsel %vm214_vm9, %v483_v8, %v1742_v5  ;;  %v486_v13 = vsel %vm214_vm9, %v484_v7, %v1743_v4  ;;  %v1695_v5 = vld [vmem:[%s2476_s11 + $0x38] sm:$0xff]  ;;  %v1693_v7 = vld [vmem:[%s2476_s11 + $0x28] sm:$0xff]  ;;  %v1692_v8 = vld [vmem:[%s2476_s11 + $0x20] sm:$0xff] }
 0x64d   :  { %713 = vmatpush.bf16.msrb.mxu3 %v1695_v5 }
 0x664   :  { %v1746_v6 = vpop.permute.xlu0 %1745 }
 0x665   :  { %v1748_v9 = vunpack.i.h.bf16 %v1746_v6  ;;  %v1747_v11 = vunpack.i.l.bf16 %v1746_v6  ;;  %v1694_v6 = vld [vmem:[%s2476_s11 + $0x30] sm:$0xff] }
 0x666   :  { %714 = vmatpush.bf16.msrb.mxu3 %v1694_v6 }
 0x667   :  { %v489_v14 = vsel %vm487_vm10, %v486_v13, %v1748_v9  ;;  %v488_v15 = vsel %vm487_vm10, %v485_v12, %v1747_v11  ;;  %v1691_v9 = vld [vmem:[%s2476_s11 + $0x18] sm:$0xff]  ;;  %v1690_v11 = vld [vmem:[%s2476_s11 + $0x10] sm:$0xff]  ;;  %v1689_v12 = vld [vmem:[%s2476_s11 + $0x8] sm:$0xff] }
 0x668   :  { %v490_v16 = vpack.c.bf16 %v489_v14, %v488_v15  ;;  %v1688_v13 = vld [vmem:[%s2476_s11] sm:$0xff] }
 0x669   :  { %v1769_v14 = vld [vmem:[%s2475_s10] ss:$0 sm:$0xff] }
 0x66a   :  { %1528 = vmatmul.msk.bf16.vlgmr.msra.gmra.mxu0 %vm93_vm0, %v490_v16  ;;  %715 = vmatpush.bf16.msrb.mxu3 %v1693_v7 }
 0x66e   :  { %716 = vmatpush.bf16.msrb.mxu3 %v1692_v8 }
 0x672   :  { %717 = vmatpush.bf16.msrb.mxu3 %v1691_v9 }
 0x676   :  { %718 = vmatpush.bf16.msrb.mxu3 %v1690_v11 }
 0x67a   :  { %719 = vmatpush.bf16.msrb.mxu3 %v1689_v12 }
 0x67e   :  { %720 = vmatpush.bf16.msrb.mxu3 %v1688_v13 }
 0x6e7   :  { %v519_v17 = vpop.f32.mrf.mxu0 }
 0x6e8   :  { %v524_v31 = vadd.f32 %v519_v17, %v2070_v0 }
 0x6ea   :  { %v2193_v18 = vadd.f32 %v1766_v32, %v524_v31 }
 0x6ec   :  { %v534_v19 = vsel %vm93_vm0, %v2193_v18, 0.0 }
 0x6ed   :  { %535 = vadd.xlane.f32.xlu2 %v534_v19 }
 0x6ef   :  { %v521_v20 = vpop.f32.mrf.mxu0 }
 0x6f0   :  { %v525_v21 = vadd.f32 %v521_v20, %v2077_v2 }
 0x6f2   :  { %v2198_v22 = vadd.f32 %v1766_v32, %v525_v21 }
 0x6f4   :  { %v537_v23 = vsel %vm93_vm0, %v2198_v22, 0.0 }
 0x6f5   :  { %538 = vadd.xlane.f32.xlu1 %v537_v23 }
 0x760   :  { %v536_v24 = vpop.xlane.xlu2 %535 }
 0x761   :  { %v540_v25 = vmul.f32 %v536_v24, %v2081_v10 }
 0x763   :  { %v542_v0 = vsub.f32 %v2193_v18, %v540_v25 }
 0x765   :  { %v544_v26 = vmul.f32 %v542_v0, %v542_v0 }
 0x767   :  { %v546_v27 = vsel %vm93_vm0, %v544_v26, 0.0 }
 0x768   :  { %547 = vadd.xlane.f32.xlu0 %v546_v27  ;;  %v539_v28 = vpop.xlane.xlu1 %538 }
 0x769   :  { %v541_v29 = vmul.f32 %v539_v28, %v2081_v10 }
 0x76b   :  { %v543_v2 = vsub.f32 %v2198_v22, %v541_v29 }
 0x76d   :  { %v545_v30 = vmul.f32 %v543_v2, %v543_v2 }
 0x76f   :  { %v549_v33 = vsel %vm93_vm0, %v545_v30, 0.0 }
 0x770   :  { %550 = vadd.xlane.f32.xlu2 %v549_v33 }
 0x7db   :  { %v548_v35 = vpop.xlane.xlu0 %547 }
 0x7dc   :  { %v552_v36 = vmul.f32 %v548_v35, %v2081_v10 }
 0x7de   :  { %v554_v37 = vadd.f32 1e-05, %v552_v36 }
 0x7e0   :  { %1818 = vrsqrt.f32 %v554_v37  ;;  %vm562_vm12 = vweird.f32 %v554_v37 }
 0x7e3   :  { %v551_v38 = vpop.xlane.xlu2 %550 }
 0x7e4   :  { %v553_v39 = vmul.f32 %v551_v38, %v2081_v10 }
 0x7e6   :  { %v1819_v40 = vpop.eup %1818  ;;  %v555_v41 = vadd.f32 1e-05, %v553_v39 }
 0x7e7   :  { %v557_v42 = vmul.f32 %v1819_v40, %v554_v37  ;;  %vm563_vm11 = vweird.f32 %v1819_v40  ;;  %v1770_v37 = vld [vmem:[%s2477_s12] ss:$0 sm:$0xff] }
 0x7e8   :  { %1820 = vrsqrt.f32 %v555_v41  ;;  %vm564_vm13 = vmor %vm562_vm12, %vm563_vm11  ;;  %vm572_vm15 = vweird.f32 %v555_v41 }
 0x7e9   :  { %v558_v43 = vmul.f32 %v1819_v40, %v557_v42 }
 0x7eb   :  { %v559_v44 = vmul.f32 0.5, %v558_v43 }
 0x7ed   :  { %v560_v45 = vsub.f32 1.5, %v559_v44 }
 0x7ee   :  { %v1821_v46 = vpop.eup %1820 }
 0x7ef   :  { %v561_v47 = vmul.f32 %v1819_v40, %v560_v45  ;;  %v567_v48 = vmul.f32 %v1821_v46, %v555_v41  ;;  %vm573_vm14 = vweird.f32 %v1821_v46 }
 0x7f0   :  { %vm574_vm1 = vmor %vm572_vm15, %vm573_vm14 }
 0x7f1   :  { %v568_v49 = vmul.f32 %v1821_v46, %v567_v48  ;;  %v565_v50 = vsel %vm564_vm13, %v1819_v40, %v561_v47 }
 0x7f2   :  { %v576_v55 = vmul.f32 %v565_v50, %v542_v0 }
 0x7f3   :  { %v569_v51 = vmul.f32 0.5, %v568_v49 }
 0x7f4   :  { %v581_v60 = vmul.f32 %v1767_v53, %v576_v55  ;;  %v1697_v55 = vld [vmem:[#allocation2 + $0x18] sm:$0xff] }
 0x7f5   :  { %v570_v52 = vsub.f32 1.5, %v569_v51  ;;  %814 = vmatpush.bf16.msra.mxu2 %v1697_v55 }
 0x7f6   :  { %v586_v1 = vadd.f32 %v1768_v59, %v581_v60 }
 0x7f7   :  { %v571_v56 = vmul.f32 %v1821_v46, %v570_v52 }
 0x7f9   :  { %v575_v57 = vsel %vm574_vm1, %v1821_v46, %v571_v56 }
 0x7fa   :  { %v577_v61 = vmul.f32 %v575_v57, %v543_v2 }
 0x7fc   :  { %v582_v63 = vmul.f32 %v1767_v53, %v577_v61 }
 0x7fe   :  { %v587_v3 = vadd.f32 %v1768_v59, %v582_v63  ;;  %v1696_v59 = vld [vmem:[#allocation2 + $0x10] sm:$0xff] }
 0x7ff   :  { %815 = vmatpush.bf16.msra.mxu2 %v1696_v59 }
 0x800   :  { %v588_v4 = vpack.c.bf16 %v587_v3, %v586_v1 }
 0x802   :  { %1537 = vmatmul.msk.bf16.vlgmr.msra.gmra.mxu1 %vm93_vm0, %v588_v4 }
 0x87f   :  { %v621_v15 = vpop.f32.mrf.mxu1 }
 0x880   :  { %v622_v16 = vadd.f32 %v1769_v14, %v621_v15 }
 0x882   :  { %v628_v32 = vmul.f32 0.044715, %v622_v16  ;;  %v626_v30 = vmul.f32 0.5, %v622_v16 }
 0x884   :  { %v630_v17 = vmul.f32 %v628_v32, %v622_v16 }
 0x886   :  { %v632_v31 = vmul.f32 %v630_v17, %v622_v16 }
 0x887   :  { %v623_v19 = vpop.f32.mrf.mxu1 }
 0x888   :  { %v634_v20 = vadd.f32 %v632_v31, %v622_v16  ;;  %v624_v21 = vadd.f32 %v1769_v14, %v623_v19  ;;  %v1771_v16 = vld [vmem:[%s2467_s2 + $0x1] ss:$0 sm:$0xff]  ;;  %s2492_s2 = smov 56  }
 0x889   :  { %v1772_v19 = vld [vmem:[%s2468_s3 + $0x1] ss:$0 sm:$0xff]  ;;  %s2493_s3 = smov 48  }
 0x88a   :  { %v629_v23 = vmul.f32 0.044715, %v624_v21  ;;  %v636_v24 = vmul.f32 0.7978846, %v634_v20  ;;  %v627_v33 = vmul.f32 0.5, %v624_v21 }
 0x88c   :  { %v631_v25 = vmul.f32 %v629_v23, %v624_v21  ;;  %1822 = vtanh.f32 %v636_v24 }
 0x88e   :  { %v633_v0 = vmul.f32 %v631_v25, %v624_v21 }
 0x890   :  { %v635_v26 = vadd.f32 %v633_v0, %v624_v21 }
 0x892   :  { %v637_v27 = vmul.f32 0.7978846, %v635_v26  ;;  %v1823_v28 = vpop.eup %1822 }
 0x893   :  { %v640_v29 = vadd.f32 1.0, %v1823_v28 }
 0x894   :  { %1824 = vtanh.f32 %v637_v27 }
 0x895   :  { %v642_v35 = vmul.f32 %v640_v29, %v626_v30 }
 0x89a   :  { %v1825_v2 = vpop.eup %1824 }
 0x89b   :  { %v641_v34 = vadd.f32 1.0, %v1825_v2 }
 0x89d   :  { %v643_v36 = vmul.f32 %v641_v34, %v627_v33 }
 0x89f   :  { %v644_v54 = vpack.c.bf16 %v643_v36, %v642_v35 }
 0x8a1   :  { %721 = vmatmul.bf16.vlgmr.msrb.gmra.mxu3 %v644_v54 }
 0x924   :  { %v722_v38 = vpop.f32.mrf.mxu3 }
 0x925   :  { %v723_v39 = vadd.f32 %v1770_v37, %v722_v38 }
 0x927   :  { %v2254_v40 = vadd.f32 %v723_v39, %v2193_v18 }
 0x929   :  { %v733_v41 = vsel %vm93_vm0, %v2254_v40, 0.0 }
 0x92a   :  { %734 = vadd.xlane.f32.xlu1 %v733_v41 }
 0x92c   :  { %v724_v42 = vpop.f32.mrf.mxu3 }
 0x92d   :  { %v725_v43 = vadd.f32 %v1770_v37, %v724_v42 }
 0x92f   :  { %v2259_v44 = vadd.f32 %v725_v43, %v2198_v22 }
 0x931   :  { %v736_v45 = vsel %vm93_vm0, %v2259_v44, 0.0 }
 0x932   :  { %737 = vadd.xlane.f32.xlu2 %v736_v45 }
 0x99d   :  { %v735_v46 = vpop.xlane.xlu1 %734 }
 0x99e   :  { %v739_v47 = vmul.f32 %v735_v46, %v2081_v10 }
 0x9a0   :  { %v741_v48 = vsub.f32 %v2254_v40, %v739_v47 }
 0x9a2   :  { %v743_v18 = vmul.f32 %v741_v48, %v741_v48 }
 0x9a4   :  { %v745_v49 = vsel %vm93_vm0, %v743_v18, 0.0 }
 0x9a5   :  { %v738_v50 = vpop.xlane.xlu2 %737  ;;  %746 = vadd.xlane.f32.xlu0 %v745_v49 }
 0x9a6   :  { %v740_v51 = vmul.f32 %v738_v50, %v2081_v10 }
 0x9a8   :  { %v742_v52 = vsub.f32 %v2259_v44, %v740_v51 }
 0x9aa   :  { %v744_v22 = vmul.f32 %v742_v52, %v742_v52 }
 0x9ac   :  { %v748_v53 = vsel %vm93_vm0, %v744_v22, 0.0 }
 0x9ad   :  { %749 = vadd.xlane.f32.xlu1 %v748_v53 }
 0xa18   :  { %v747_v56 = vpop.xlane.xlu0 %746 }
 0xa19   :  { %v751_v57 = vmul.f32 %v747_v56, %v2081_v10 }
 0xa1b   :  { %v753_v60 = vadd.f32 1e-05, %v751_v57 }
 0xa1d   :  { %1826 = vrsqrt.f32 %v753_v60  ;;  %vm761_vm3 = vweird.f32 %v753_v60 }
 0xa20   :  { %v750_v61 = vpop.xlane.xlu1 %749 }
 0xa21   :  { %v752_v63 = vmul.f32 %v750_v61, %v2081_v10 }
 0xa23   :  { %v1827_v1 = vpop.eup %1826  ;;  %v754_v3 = vadd.f32 1e-05, %v752_v63 }
 0xa24   :  { %v756_v4 = vmul.f32 %v1827_v1, %v753_v60  ;;  %vm762_vm2 = vweird.f32 %v1827_v1 }
 0xa25   :  { %1828 = vrsqrt.f32 %v754_v3  ;;  %vm763_vm4 = vmor %vm761_vm3, %vm762_vm2  ;;  %vm771_vm6 = vweird.f32 %v754_v3 }
 0xa26   :  { %v757_v5 = vmul.f32 %v1827_v1, %v756_v4 }
 0xa28   :  { %v758_v6 = vmul.f32 0.5, %v757_v5 }
 0xa2a   :  { %v759_v7 = vsub.f32 1.5, %v758_v6 }
 0xa2b   :  { %v1829_v8 = vpop.eup %1828 }
 0xa2c   :  { %v760_v9 = vmul.f32 %v1827_v1, %v759_v7  ;;  %v766_v11 = vmul.f32 %v1829_v8, %v754_v3  ;;  %vm772_vm5 = vweird.f32 %v1829_v8 }
 0xa2d   :  { %vm773_vm7 = vmor %vm771_vm6, %vm772_vm5 }
 0xa2e   :  { %v767_v12 = vmul.f32 %v1829_v8, %v766_v11  ;;  %v764_v13 = vsel %vm763_vm4, %v1827_v1, %v760_v9 }
 0xa2f   :  { %v775_v32 = vmul.f32 %v764_v13, %v741_v48 }
 0xa30   :  { %v768_v14 = vmul.f32 0.5, %v767_v12 }
 0xa31   :  { %v780_v20 = vmul.f32 %v1771_v16, %v775_v32 }
 0xa32   :  { %v769_v15 = vsub.f32 1.5, %v768_v14 }
 0xa33   :  { %v785_v24 = vadd.f32 %v1772_v19, %v780_v20 }
 0xa34   :  { %v770_v17 = vmul.f32 %v1829_v8, %v769_v15 }
 0xa36   :  { %v774_v31 = vsel %vm773_vm7, %v1829_v8, %v770_v17 }
 0xa37   :  { %v776_v21 = vmul.f32 %v774_v31, %v742_v52 }
 0xa39   :  { %v781_v23 = vmul.f32 %v1771_v16, %v776_v21 }
 0xa3b   :  { %v786_v25 = vadd.f32 %v1772_v19, %v781_v23 }
 0xa3d   :  { %v787_v0 = vpack.c.bf16 %v786_v25, %v785_v24 }
 0xa3f   :  { %1580 = vmatmul.msk.bf16.vlgmr.msra.gmra.mxu2 %vm93_vm0, %v787_v0 }
 0xac2   :  { %v817_v26 = vpop.f32.mrf.mxu2 }
 0xaca   :  { %v819_v27 = vpop.f32.mrf.mxu2 }
 0xacb   :  { %v2278_v28 = vpack.c.bf16 %v819_v27, %v817_v26 }
 0xacd   :  { %824 = vrot.lane.b32.xlu2 %v2278_v28, %s1957_s25  ;;  %s2495_s25 = smov 8  }
 0xad5   :  { %889 = vrot.lane.b32.xlu2 %v2278_v28, %s1959_s1  ;;  %s2497_s1 = smov 16  }
 0xadd   :  { %958 = vrot.lane.b32.xlu2 %v2278_v28, %s1961_s4 }
 0xae5   :  { %956 = vrot.lane.b32.xlu2 %v2278_v28, %s1963_s5 }
 0xb27   :  { %v825_v29 = vpop.permute.xlu2 %824 }
 0xb28   :  { %v830_v2 = vsel %vm193_vm8, %v825_v29, 0 }
 0xb29   :  { %839 = vmatpush.bf16.xpose.msrb.mxu0 %v830_v2 }
 0xb2f   :  { %v890_v18 = vpop.permute.xlu2 %889 }
 0xb30   :  { %1581 = vmatmul.msk.bf16.vlgmr.msrb.gmra.mxu0 %vm193_vm8, %v2278_v28 }
 0xb37   :  { %v959_v51 = vpop.permute.xlu2 %958 }
 0xb38   :  { %v964_v22 = vsel %vm193_vm8, %v959_v51, 0 }
 0xb3f   :  { %v957_v7 = vpop.permute.xlu2 %956 }
 0xbad   :  { %v841_v30 = vpop.f32.mrf.mxu0 }
 0xbae   :  { %v842_v33 = vadd.f32 %v841_v30, %v2110_v58 }
 0xbb0   :  { %v846_v34 = vsel %vm214_vm9, %v842_v33, -inf }
 0xbb1   :  { %847 = vmax.xlane.f32.xlu0 %v846_v34 }
 0xbb5   :  { %v843_v35 = vpop.f32.mrf.mxu0 }
 0xbb6   :  { %v844_v36 = vadd.f32 %v843_v35, %v2117_v62 }
 0xbb8   :  { %v849_v54 = vsel %vm214_vm9, %v844_v36, -inf }
 0xbb9   :  { %850 = vmax.xlane.f32.xlu1 %v849_v54 }
 0xbc5   :  { %891 = vrot.lane.b32.xlu0 %v2278_v28, %s1960_s17 }
 0xbd2   :  { %869 = vrot.lane.b32.xlu1 %v2278_v28, %s1953_s29  ;;  %s2494_s29 = smov 40  }
 0xc24   :  { %v848_v37 = vpop.xlane.xlu0 %847 }
 0xc25   :  { %v852_v38 = vsub.f32 %v842_v33, %v848_v37 }
 0xc27   :  { %v854_v39 = vmul.f32 1.442695, %v852_v38 }
 0xc29   :  { %1830 = vpow2.f32 %v854_v39 }
 0xc2c   :  { %v851_v41 = vpop.xlane.xlu1 %850 }
 0xc2d   :  { %v853_v42 = vsub.f32 %v844_v36, %v851_v41 }
 0xc2f   :  { %v1831_v43 = vpop.eup %1830  ;;  %v856_v45 = vmul.f32 1.442695, %v853_v42 }
 0xc30   :  { %v858_v46 = vsel %vm214_vm9, %v1831_v43, 0.0 }
 0xc31   :  { %1832 = vpow2.f32 %v856_v45  ;;  %859 = vadd.xlane.f32.xlu0 %v858_v46 }
 0xc37   :  { %v1833_v47 = vpop.eup %1832  ;;  %v892_v48 = vpop.permute.xlu0 %891 }
 0xc38   :  { %v897_v49 = vsel %vm193_vm8, %v892_v48, 0  ;;  %v861_v50 = vsel %vm214_vm9, %v1833_v47, 0.0 }
 0xc39   :  { %862 = vadd.xlane.f32.xlu1 %v861_v50  ;;  %906 = vmatpush.bf16.xpose.msrb.mxu2 %v897_v49 }
 0xc40   :  { %1583 = vmatmul.msk.bf16.vlgmr.msrb.gmra.mxu2 %vm193_vm8, %v890_v18 }
 0xc44   :  { %v870_v52 = vpop.permute.xlu1 %869 }
 0xc45   :  { %882 = vmatpush.bf16.msrb.mxu1 %v870_v52  ;;  %1025 = vrot.lane.b32.xlu0 %v2278_v28, %s1958_s0  ;;  %s2496_s0 = smov 24  }
 0xc49   :  { %973 = vmatpush.bf16.xpose.msra.mxu1 %v964_v22 }
 0xc52   :  { %1023 = vrot.lane.b32.xlu1 %v2278_v28, %s1962_s18  ;;  %s1971_s18 = smov 256  }
 0xca4   :  { %v860_v53 = vpop.xlane.xlu0 %859 }
 0xca5   :  { %1834 = vrcp.f32 %v860_v53 }
 0xcab   :  { %v1835_v56 = vpop.eup %1834 }
 0xcac   :  { %v863_v55 = vpop.xlane.xlu1 %862  ;;  %v866_v59 = vmul.f32 %v1835_v56, %v1831_v43 }
 0xcad   :  { %1836 = vrcp.f32 %v863_v55 }
 0xcb3   :  { %v1837_v57 = vpop.eup %1836 }
 0xcb4   :  { %v867_v60 = vmul.f32 %v1837_v57, %v1833_v47 }
 0xcb6   :  { %v868_v61 = vpack.c.bf16 %v867_v60, %v866_v59 }
 0xcb7   :  { %v1026_v63 = vpop.permute.xlu0 %1025 }
 0xcb8   :  { %v1031_v1 = vsel %vm193_vm8, %v1026_v63, 0  ;;  %1582 = vmatmul.msk.bf16.vlgmr.msrb.gmra.mxu1 %vm214_vm9, %v868_v61 }
 0xcb9   :  { %1040 = vmatpush.bf16.xpose.msra.mxu2 %v1031_v1 }
 0xcc3   :  { %v908_v3 = vpop.f32.mrf.mxu2 }
 0xcc4   :  { %v909_v4 = vadd.f32 %v908_v3, %v2110_v58  ;;  %v1024_v5 = vpop.permute.xlu1 %1023 }
 0xcc5   :  { %1587 = vmatmul.msk.bf16.vlgmr.msra.gmra.mxu2 %vm193_vm8, %v1024_v5 }
 0xcc6   :  { %v913_v6 = vsel %vm214_vm9, %v909_v4, -inf }
 0xcc7   :  { %914 = vmax.xlane.f32.xlu0 %v913_v6 }
 0xcc8   :  { %1585 = vmatmul.msk.bf16.vlgmr.msra.gmra.mxu1 %vm193_vm8, %v957_v7 }
 0xccb   :  { %v910_v8 = vpop.f32.mrf.mxu2 }
 0xccc   :  { %v911_v9 = vadd.f32 %v910_v8, %v2117_v62 }
 0xcce   :  { %v916_v11 = vsel %vm214_vm9, %v911_v9, -inf }
 0xccf   :  { %917 = vmax.xlane.f32.xlu2 %v916_v11 }
 0xd35   :  { %v2316_v12 = vpop.f32.mrf.mxu1 }
 0xd3a   :  { %v915_v16 = vpop.xlane.xlu0 %914 }
 0xd3b   :  { %v919_v19 = vsub.f32 %v909_v4, %v915_v16 }
 0xd3d   :  { %v2318_v13 = vpop.f32.mrf.mxu1  ;;  %v921_v24 = vmul.f32 1.442695, %v919_v19 }
 0xd42   :  { %v918_v14 = vpop.xlane.xlu2 %917 }
 0xd43   :  { %v920_v15 = vsub.f32 %v911_v9, %v918_v14 }
 0xd45   :  { %v975_v32 = vpop.f32.mrf.mxu1  ;;  %v923_v17 = vmul.f32 1.442695, %v920_v15 }
 0xd46   :  { %v976_v31 = vadd.f32 %v975_v32, %v2110_v58 }
 0xd47   :  { %1838 = vpow2.f32 %v923_v17 }
 0xd48   :  { %v1042_v20 = vpop.f32.mrf.mxu2  ;;  %v980_v21 = vsel %vm214_vm9, %v976_v31, -inf  ;;  %1840 = vpow2.f32 %v921_v24 }
 0xd49   :  { %v1043_v23 = vadd.f32 %v1042_v20, %v2110_v58  ;;  %981 = vmax.xlane.f32.xlu1 %v980_v21 }
 0xd4b   :  { %v1047_v25 = vsel %vm214_vm9, %v1043_v23, -inf }
 0xd4c   :  { %1048 = vmax.xlane.f32.xlu2 %v1047_v25 }
 0xd4d   :  { %v977_v0 = vpop.f32.mrf.mxu1  ;;  %v1839_v27 = vpop.eup %1838 }
 0xd4e   :  { %v978_v26 = vadd.f32 %v977_v0, %v2117_v62  ;;  %v928_v58 = vsel %vm214_vm9, %v1839_v27, 0.0  ;;  %v1841_v34 = vpop.eup %1840 }
 0xd4f   :  { %v925_v35 = vsel %vm214_vm9, %v1841_v34, 0.0 }
 0xd50   :  { %v1044_v29 = vpop.f32.mrf.mxu2  ;;  %v983_v2 = vsel %vm214_vm9, %v978_v26, -inf }
 0xd51   :  { %v1045_v30 = vadd.f32 %v1044_v29, %v2117_v62  ;;  %984 = vmax.xlane.f32.xlu0 %v983_v2  ;;  %v1699_v2 = vld [vmem:[#allocation5 + $0x18] sm:$0xff] }
 0xd52   :  { %1147 = vmatpush.bf16.msrb.mxu1 %v1699_v2 }
 0xd53   :  { %v1050_v33 = vsel %vm214_vm9, %v1045_v30, -inf }
 0xd54   :  { %1051 = vmax.xlane.f32.xlu1 %v1050_v33  ;;  %929 = vadd.xlane.f32.xlu2 %v928_v58 }
 0xd59   :  { %926 = vadd.xlane.f32.xlu0 %v925_v35 }
 0xd6d   :  { %936 = vrot.lane.b32.xlu1 %v2278_v28, %s2492_s2 }
 0xdbc   :  { %v982_v36 = vpop.xlane.xlu1 %981 }
 0xdbd   :  { %v986_v38 = vsub.f32 %v976_v31, %v982_v36 }
 0xdbf   :  { %v1049_v54 = vpop.xlane.xlu2 %1048  ;;  %v988_v62 = vmul.f32 1.442695, %v986_v38 }
 0xdc0   :  { %v1053_v37 = vsub.f32 %v1043_v23, %v1049_v54 }
 0xdc2   :  { %v1055_v39 = vmul.f32 1.442695, %v1053_v37 }
 0xdc4   :  { %1842 = vpow2.f32 %v1055_v39  ;;  %v985_v41 = vpop.xlane.xlu0 %984 }
 0xdc5   :  { %1844 = vpow2.f32 %v988_v62  ;;  %v987_v46 = vsub.f32 %v978_v26, %v985_v41 }
 0xdc7   :  { %v1052_v42 = vpop.xlane.xlu1 %1051  ;;  %v990_v18 = vmul.f32 1.442695, %v987_v46  ;;  %v930_v52 = vpop.xlane.xlu2 %929 }
 0xdc8   :  { %v1054_v43 = vsub.f32 %v1045_v30, %v1052_v42  ;;  %v1698_v30 = vld [vmem:[#allocation5 + $0x10] sm:$0xff] }
 0xdc9   :  { %1148 = vmatpush.bf16.msrb.mxu1 %v1698_v30 }
 0xdca   :  { %v1843_v45 = vpop.eup %1842  ;;  %v1057_v47 = vmul.f32 1.442695, %v1054_v43 }
 0xdcb   :  { %v1059_v48 = vsel %vm214_vm9, %v1843_v45, 0.0  ;;  %v1845_v49 = vpop.eup %1844 }
 0xdcc   :  { %1846 = vpow2.f32 %v1057_v47  ;;  %1060 = vadd.xlane.f32.xlu0 %v1059_v48  ;;  %v927_v50 = vpop.xlane.xlu0 %926  ;;  %v992_v53 = vsel %vm214_vm9, %v1845_v49, 0.0 }
 0xdcd   :  { %1848 = vpow2.f32 %v990_v18 }
 0xdce   :  { %1850 = vrcp.f32 %v927_v50 }
 0xdcf   :  { %1852 = vrcp.f32 %v930_v52 }
 0xdd2   :  { %v1847_v51 = vpop.eup %1846 }
 0xdd3   :  { %v1062_v22 = vsel %vm214_vm9, %v1847_v51, 0.0  ;;  %v1849_v55 = vpop.eup %1848 }
 0xdd4   :  { %1063 = vadd.xlane.f32.xlu2 %v1062_v22  ;;  %993 = vadd.xlane.f32.xlu0 %v992_v53  ;;  %v1851_v56 = vpop.eup %1850  ;;  %v995_v57 = vsel %vm214_vm9, %v1849_v55, 0.0 }
 0xdd5   :  { %v1853_v59 = vpop.eup %1852  ;;  %v933_v60 = vmul.f32 %v1851_v56, %v1841_v34 }
 0xdd6   :  { %v934_v61 = vmul.f32 %v1853_v59, %v1839_v27 }
 0xdd8   :  { %v935_v1 = vpack.c.bf16 %v934_v61, %v933_v60 }
 0xddc   :  { %996 = vadd.xlane.f32.xlu2 %v995_v57 }
 0xddf   :  { %v937_v63 = vpop.permute.xlu1 %936 }
 0xde0   :  { %949 = vmatpush.bf16.msra.mxu0 %v937_v63 }
 0xde3   :  { %1584 = vmatmul.msk.bf16.vlgmr.msra.gmra.mxu0 %vm214_vm9, %v935_v1  ;;  %v1701_v1 = vld [vmem:[%s2474_s9 + $0x18] sm:$0xff] }
 0xde8   :  { %1003 = vrot.lane.b32.xlu0 %v2278_v28, %s2493_s3 }
 0xdf4   :  { %1070 = vrot.lane.b32.xlu2 %v2278_v28, %s2494_s29 }
 0xe3f   :  { %v1061_v3 = vpop.xlane.xlu0 %1060 }
 0xe47   :  { %v1064_v4 = vpop.xlane.xlu2 %1063  ;;  %v994_v5 = vpop.xlane.xlu0 %993 }
 0xe48   :  { %1854 = vrcp.f32 %v1064_v4 }
 0xe49   :  { %1856 = vrcp.f32 %v1061_v3 }
 0xe4e   :  { %v1855_v7 = vpop.eup %1854 }
 0xe4f   :  { %v997_v6 = vpop.xlane.xlu2 %996  ;;  %v1857_v8 = vpop.eup %1856  ;;  %v1068_v9 = vmul.f32 %v1855_v7, %v1847_v51 }
 0xe50   :  { %1858 = vrcp.f32 %v997_v6  ;;  %v1067_v15 = vmul.f32 %v1857_v8, %v1843_v45  ;;  %v1700_v6 = vld [vmem:[%s2474_s9 + $0x10] sm:$0xff] }
 0xe51   :  { %1860 = vrcp.f32 %v994_v5 }
 0xe52   :  { %v1069_v17 = vpack.c.bf16 %v1068_v9, %v1067_v15 }
 0xe56   :  { %v1859_v11 = vpop.eup %1858 }
 0xe57   :  { %v1861_v14 = vpop.eup %1860  ;;  %v1071_v16 = vpop.permute.xlu2 %1070  ;;  %v1001_v32 = vmul.f32 %v1859_v11, %v1849_v55 }
 0xe58   :  { %1083 = vmatpush.bf16.msrb.mxu0 %v1071_v16  ;;  %v1000_v31 = vmul.f32 %v1861_v14, %v1845_v49 }
 0xe5a   :  { %v1004_v28 = vpop.permute.xlu0 %1003  ;;  %v1002_v19 = vpack.c.bf16 %v1001_v32, %v1000_v31 }
 0xe5b   :  { %1016 = vmatpush.bf16.msra.mxu3 %v1004_v28  ;;  %1588 = vmatmul.msk.bf16.vlgmr.msrb.gmra.mxu0 %vm214_vm9, %v1069_v17 }
 0xe5e   :  { %1586 = vmatmul.msk.bf16.vlgmr.msra.gmra.mxu3 %vm214_vm9, %v1002_v19 }
 0xe5f   :  { %1254 = vmatpush.bf16.msrb.mxu3 %v1701_v1 }
 0xe60   :  { %v951_v20 = vpop.f32.mrf.mxu0 }
 0xe63   :  { %1255 = vmatpush.bf16.msrb.mxu3 %v1700_v6 }
 0xe68   :  { %v953_v21 = vpop.f32.mrf.mxu0 }
 0xe69   :  { %v1749_v23 = vpack.i.bf16 %v953_v21, %v951_v20 }
 0xe6b   :  { %1750 = vrot.lane.b32.xlu1 %v1749_v23, %s2495_s25 }
 0xed8   :  { %v1085_v24 = vpop.f32.mrf.mxu0 }
 0xedd   :  { %v1751_v33 = vpop.permute.xlu1 %1750 }
 0xede   :  { %v1753_v58 = vunpack.i.h.bf16 %v1751_v33  ;;  %v1752_v34 = vunpack.i.l.bf16 %v1751_v33 }
 0xee0   :  { %v1087_v25 = vpop.f32.mrf.mxu0  ;;  %v1115_v38 = vsel %vm193_vm8, %v2318_v13, %v1753_v58  ;;  %v1114_v39 = vsel %vm193_vm8, %v2316_v12, %v1752_v34  ;;  %v1773_v13 = vld [vmem:[%s2471_s6 + $0x1] ss:$0 sm:$0xff] }
 0xee1   :  { %v1759_v0 = vpack.i.bf16 %v1087_v25, %v1085_v24  ;;  %v1018_v26 = vpop.f32.mrf.mxu3  ;;  %v1774_v24 = vld [vmem:[%s2472_s7 + $0x1] ss:$0 sm:$0xff] }
 0xee3   :  { %1760 = vrot.lane.b32.xlu0 %v1759_v0, %s2496_s0 }
 0xee9   :  { %v1020_v27 = vpop.f32.mrf.mxu3 }
 0xeea   :  { %v1754_v29 = vpack.i.bf16 %v1020_v27, %v1018_v26  ;;  %v1775_v27 = vld [vmem:[%s2473_s8 + $0x1] ss:$0 sm:$0xff] }
 0xeec   :  { %1755 = vrot.lane.b32.xlu1 %v1754_v29, %s2497_s1 }
 0xf55   :  { %v1761_v35 = vpop.permute.xlu0 %1760 }
 0xf56   :  { %v1763_v62 = vunpack.i.h.bf16 %v1761_v35  ;;  %v1762_v41 = vunpack.i.l.bf16 %v1761_v35  ;;  %v1709_v35 = vld [vmem:[%s2476_s11 + $0x78] sm:$0xff] }
 0xf57   :  { %1351 = vmatpush.bf16.msrb.mxu2 %v1709_v35 }
 0xf5e   :  { %v1756_v36 = vpop.permute.xlu1 %1755 }
 0xf5f   :  { %v1758_v54 = vunpack.i.h.bf16 %v1756_v36  ;;  %v1757_v37 = vunpack.i.l.bf16 %v1756_v36  ;;  %v1708_v36 = vld [vmem:[%s2476_s11 + $0x70] sm:$0xff] }
 0xf60   :  { %1352 = vmatpush.bf16.msrb.mxu2 %v1708_v36  ;;  %v1668_v36 = vld [vmem:[%s2480_s15 + $0x8] sm:$0xf0] }
 0xf61   :  { %v1117_v42 = vsel %vm214_vm9, %v1115_v38, %v1758_v54  ;;  %v1116_v43 = vsel %vm214_vm9, %v1114_v39, %v1757_v37  ;;  %v1707_v54 = vld [vmem:[%s2476_s11 + $0x68] sm:$0xff]  ;;  %v1706_v37 = vld [vmem:[%s2476_s11 + $0x60] sm:$0xff]  ;;  %v1705_v38 = vld [vmem:[%s2476_s11 + $0x58] sm:$0xff] }
 0xf62   :  { %v1118_v45 = vsel %vm487_vm10, %v1116_v43, %v1762_v41  ;;  %v1119_v46 = vsel %vm487_vm10, %v1117_v42, %v1763_v62  ;;  %v1704_v39 = vld [vmem:[%s2476_s11 + $0x50] sm:$0xff]  ;;  %v1703_v62 = vld [vmem:[%s2476_s11 + $0x48] sm:$0xff]  ;;  %v1702_v41 = vld [vmem:[%s2476_s11 + $0x40] sm:$0xff] }
 0xf63   :  { %v1120_v47 = vpack.c.bf16 %v1119_v46, %v1118_v45  ;;  %v1776_v42 = vld [vmem:[%s2475_s10 + $0x1] ss:$0 sm:$0xff] }
 0xf64   :  { %1353 = vmatpush.bf16.msrb.mxu2 %v1707_v54 }
 0xf65   :  { %1597 = vmatmul.msk.bf16.vlgmr.msrb.gmra.mxu1 %vm93_vm0, %v1120_v47 }
 0xf68   :  { %1354 = vmatpush.bf16.msrb.mxu2 %v1706_v37 }
 0xf6c   :  { %1355 = vmatpush.bf16.msrb.mxu2 %v1705_v38 }
 0xf70   :  { %1356 = vmatpush.bf16.msrb.mxu2 %v1704_v39 }
 0xf74   :  { %1357 = vmatpush.bf16.msrb.mxu2 %v1703_v62 }
 0xf78   :  { %1358 = vmatpush.bf16.msrb.mxu2 %v1702_v41 }
 0xfe2   :  { %v1150_v48 = vpop.f32.mrf.mxu1 }
 0xfe3   :  { %v1155_v12 = vadd.f32 %v1150_v48, %v2254_v40 }
 0xfe5   :  { %v2359_v18 = vadd.f32 %v1773_v13, %v1155_v12 }
 0xfe7   :  { %v1168_v49 = vsel %vm93_vm0, %v2359_v18, 0.0 }
 0xfe8   :  { %1169 = vadd.xlane.f32.xlu1 %v1168_v49 }
 0xfea   :  { %v1152_v50 = vpop.f32.mrf.mxu1 }
 0xfeb   :  { %v1156_v51 = vadd.f32 %v1152_v50, %v2259_v44 }
 0xfed   :  { %v2364_v52 = vadd.f32 %v1773_v13, %v1156_v51 }
 0xfef   :  { %v1171_v22 = vsel %vm93_vm0, %v2364_v52, 0.0 }
 0xff0   :  { %1172 = vadd.xlane.f32.xlu2 %v1171_v22 }
0x105b   :  { %v1170_v53 = vpop.xlane.xlu1 %1169 }
0x105c   :  { %v1174_v55 = vmul.f32 %v1170_v53, %v2081_v10 }
0x105e   :  { %v1176_v40 = vsub.f32 %v2359_v18, %v1174_v55 }
0x1060   :  { %v1178_v56 = vmul.f32 %v1176_v40, %v1176_v40 }
0x1062   :  { %v1180_v57 = vsel %vm93_vm0, %v1178_v56, 0.0 }
0x1063   :  { %1181 = vadd.xlane.f32.xlu0 %v1180_v57  ;;  %v1173_v59 = vpop.xlane.xlu2 %1172 }
0x1064   :  { %v1175_v60 = vmul.f32 %v1173_v59, %v2081_v10 }
0x1066   :  { %v1177_v44 = vsub.f32 %v2364_v52, %v1175_v60 }
0x1068   :  { %v1179_v61 = vmul.f32 %v1177_v44, %v1177_v44 }
0x106a   :  { %v1183_v63 = vsel %vm93_vm0, %v1179_v61, 0.0 }
0x106b   :  { %1184 = vadd.xlane.f32.xlu1 %v1183_v63 }
0x10d6   :  { %v1182_v3 = vpop.xlane.xlu0 %1181 }
0x10d7   :  { %v1186_v4 = vmul.f32 %v1182_v3, %v2081_v10 }
0x10d9   :  { %v1188_v5 = vadd.f32 1e-05, %v1186_v4  ;;  %v1777_v4 = vld [vmem:[%s2477_s12 + $0x1] ss:$0 sm:$0xff] }
0x10db   :  { %1862 = vrsqrt.f32 %v1188_v5  ;;  %vm1196_vm9 = vweird.f32 %v1188_v5 }
0x10de   :  { %v1185_v7 = vpop.xlane.xlu1 %1184 }
0x10df   :  { %v1187_v8 = vmul.f32 %v1185_v7, %v2081_v10 }
0x10e1   :  { %v1863_v9 = vpop.eup %1862  ;;  %v1189_v11 = vadd.f32 1e-05, %v1187_v8 }
0x10e2   :  { %v1191_v14 = vmul.f32 %v1863_v9, %v1188_v5  ;;  %vm1197_vm8 = vweird.f32 %v1863_v9 }
0x10e3   :  { %1864 = vrsqrt.f32 %v1189_v11  ;;  %vm1198_vm10 = vmor %vm1196_vm9, %vm1197_vm8  ;;  %vm1206_vm12 = vweird.f32 %v1189_v11 }
0x10e4   :  { %v1192_v15 = vmul.f32 %v1863_v9, %v1191_v14 }
0x10e6   :  { %v1193_v16 = vmul.f32 0.5, %v1192_v15 }
0x10e8   :  { %v1194_v32 = vsub.f32 1.5, %v1193_v16 }
0x10e9   :  { %v1865_v17 = vpop.eup %1864 }
0x10ea   :  { %v1195_v31 = vmul.f32 %v1863_v9, %v1194_v32  ;;  %v1201_v28 = vmul.f32 %v1865_v17, %v1189_v11  ;;  %vm1207_vm11 = vweird.f32 %v1865_v17 }
0x10eb   :  { %vm1208_vm13 = vmor %vm1206_vm12, %vm1207_vm11 }
0x10ec   :  { %v1202_v19 = vmul.f32 %v1865_v17, %v1201_v28  ;;  %v1199_v20 = vsel %vm1198_vm10, %v1863_v9, %v1195_v31 }
0x10ed   :  { %v1210_v25 = vmul.f32 %v1199_v20, %v1176_v40 }
0x10ee   :  { %v1203_v21 = vmul.f32 0.5, %v1202_v19 }
0x10ef   :  { %v1215_v29 = vmul.f32 %v1774_v24, %v1210_v25  ;;  %v1712_v25 = vld [vmem:[%s2480_s15 + $0x14] sm:$0xf] }
0x10f0   :  { %v1204_v23 = vsub.f32 1.5, %v1203_v21 }
0x10f1   :  { %v1220_v33 = vadd.f32 %v1775_v27, %v1215_v29 }
0x10f2   :  { %v1205_v0 = vmul.f32 %v1865_v17, %v1204_v23 }
0x10f4   :  { %v1209_v26 = vsel %vm1208_vm13, %v1865_v17, %v1205_v0 }
0x10f5   :  { %v1211_v2 = vmul.f32 %v1209_v26, %v1177_v44  ;;  %v1676_v26 = vld [vmem:[%s2480_s15 + $0x18] sm:$0xf0] }
0x10f6   :  { %v1679_v29 = vor.u32 %v1712_v25, %v1676_v26 }
0x10f7   :  { %v1216_v30 = vmul.f32 %v1774_v24, %v1211_v2  ;;  %v1713_v24 = vld [vmem:[%s2480_s15 + $0x14] sm:$0xf0] }
0x10f8   :  { %1471 = vmatpush.bf16.msra.mxu1 %v1679_v29 }
0x10f9   :  { %v1221_v58 = vadd.f32 %v1775_v27, %v1216_v30  ;;  %v1666_v30 = vld [vmem:[%s2480_s15] sm:$0xf] }
0x10fb   :  { %v1222_v34 = vpack.c.bf16 %v1221_v58, %v1220_v33  ;;  %v1711_v33 = vld [vmem:[%s2480_s15 + $0x4] sm:$0xf0]  ;;  %v1710_v58 = vld [vmem:[%s2480_s15 + $0x4] sm:$0xf] }
0x10fc   :  { %v1667_v35 = vor.u32 %v1711_v33, %v1666_v30  ;;  %v1671_v54 = vor.u32 %v1710_v58, %v1668_v36 }
0x10fd   :  { %1614 = vmatmul.msk.bf16.vlgmr.msrb.gmra.mxu3 %vm93_vm0, %v1222_v34 }
0x10fe   :  { %1472 = vmatpush.bf16.msra.mxu1 %v1671_v54 }
0x1180   :  { %v1257_v43 = vpop.f32.mrf.mxu3 }
0x1181   :  { %v1258_v45 = vadd.f32 %v1776_v42, %v1257_v43 }
0x1183   :  { %v1264_v46 = vmul.f32 0.044715, %v1258_v45  ;;  %v1262_v60 = vmul.f32 0.5, %v1258_v45 }
0x1185   :  { %v1266_v47 = vmul.f32 %v1264_v46, %v1258_v45 }
0x1187   :  { %v1268_v13 = vmul.f32 %v1266_v47, %v1258_v45 }
0x1188   :  { %v1259_v48 = vpop.f32.mrf.mxu3 }
0x1189   :  { %v1270_v12 = vadd.f32 %v1268_v13, %v1258_v45  ;;  %v1260_v49 = vadd.f32 %v1776_v42, %v1259_v48 }
0x118b   :  { %v1265_v50 = vmul.f32 0.044715, %v1260_v49  ;;  %v1272_v51 = vmul.f32 0.7978846, %v1270_v12  ;;  %v1263_v44 = vmul.f32 0.5, %v1260_v49 }
0x118d   :  { %v1267_v22 = vmul.f32 %v1265_v50, %v1260_v49  ;;  %1866 = vtanh.f32 %v1272_v51 }
0x118f   :  { %v1269_v53 = vmul.f32 %v1267_v22, %v1260_v49 }
0x1191   :  { %v1271_v55 = vadd.f32 %v1269_v53, %v1260_v49 }
0x1193   :  { %v1273_v40 = vmul.f32 0.7978846, %v1271_v55  ;;  %v1867_v56 = vpop.eup %1866  ;;  %v1779_v55 = vld [vmem:[%s2479_s14] ss:$0 sm:$0xff]  ;;  %s1489_s14 = sshll.u32 %s2481_s16, 4  ;;  %s1490_s14 = int_to_ptr.hbm [resolvable:$true] %s1489_s14 }
0x1194   :  { %v1276_v57 = vadd.f32 1.0, %v1867_v56 }
0x1195   :  { %1868 = vtanh.f32 %v1273_v40 }
0x1196   :  { %v1278_v63 = vmul.f32 %v1276_v57, %v1262_v60 }
0x119b   :  { %v1869_v59 = vpop.eup %1868 }
0x119c   :  { %v1277_v61 = vadd.f32 1.0, %v1869_v59 }
0x119e   :  { %v1279_v1 = vmul.f32 %v1277_v61, %v1263_v44 }
0x11a0   :  { %v1280_v3 = vpack.c.bf16 %v1279_v1, %v1278_v63 }
0x11a2   :  { %1359 = vmatmul.bf16.vlgmr.msrb.gmra.mxu2 %v1280_v3 }
0x1225   :  { %v1360_v5 = vpop.f32.mrf.mxu2 }
0x1226   :  { %v1361_v6 = vadd.f32 %v1777_v4, %v1360_v5 }
0x1228   :  { %v1365_v7 = vadd.f32 %v1361_v6, %v2359_v18 }
0x122a   :  { %v1369_v8 = vsel %vm93_vm0, %v1365_v7, 0.0 }
0x122b   :  { %1370 = vadd.xlane.f32.xlu2 %v1369_v8 }
0x122d   :  { %v1362_v9 = vpop.f32.mrf.mxu2 }
0x122e   :  { %v1363_v11 = vadd.f32 %v1777_v4, %v1362_v9 }
0x1230   :  { %v1366_v14 = vadd.f32 %v1363_v11, %v2364_v52  ;;  %v1674_v52 = vld [vmem:[%s2480_s15 + $0x10] sm:$0xf] }
0x1231   :  { %v1675_v0 = vor.u32 %v1713_v24, %v1674_v52 }
0x1232   :  { %v1372_v15 = vsel %vm93_vm0, %v1366_v14, 0.0 }
0x1233   :  { %1373 = vadd.xlane.f32.xlu0 %v1372_v15  ;;  %1457 = vmatpush.bf16.msra.mxu0 %v1675_v0 }
0x1237   :  { %1458 = vmatpush.bf16.msra.mxu0 %v1667_v35 }
0x129e   :  { %v1371_v16 = vpop.xlane.xlu2 %1370 }
0x129f   :  { %v1375_v32 = vmul.f32 %v1371_v16, %v2081_v10 }
0x12a1   :  { %v1377_v17 = vsub.f32 %v1365_v7, %v1375_v32 }
0x12a3   :  { %v1379_v31 = vmul.f32 %v1377_v17, %v1377_v17 }
0x12a5   :  { %v1381_v28 = vsel %vm93_vm0, %v1379_v31, 0.0 }
0x12a6   :  { %v1374_v19 = vpop.xlane.xlu0 %1373  ;;  %1382 = vadd.xlane.f32.xlu1 %v1381_v28 }
0x12a7   :  { %v1376_v18 = vmul.f32 %v1374_v19, %v2081_v10 }
0x12a9   :  { %v1378_v20 = vsub.f32 %v1366_v14, %v1376_v18 }
0x12ab   :  { %v1380_v21 = vmul.f32 %v1378_v20, %v1378_v20 }
0x12ad   :  { %v1384_v23 = vsel %vm93_vm0, %v1380_v21, 0.0 }
0x12ae   :  { %1385 = vadd.xlane.f32.xlu2 %v1384_v23 }
0x1319   :  { %v1383_v27 = vpop.xlane.xlu1 %1382 }
0x131a   :  { %v1387_v2 = vmul.f32 %v1383_v27, %v2081_v10 }
0x131c   :  { %v1389_v34 = vadd.f32 1e-05, %v1387_v2 }
0x131e   :  { %1870 = vrsqrt.f32 %v1389_v34  ;;  %vm1397_vm15 = vweird.f32 %v1389_v34 }
0x1321   :  { %v1386_v37 = vpop.xlane.xlu2 %1385 }
0x1322   :  { %v1388_v38 = vmul.f32 %v1386_v37, %v2081_v10  ;;  %v1778_v10 = vld [vmem:[%s2478_s13] ss:$0 sm:$0xff]  ;;  %s1970_s13 = smov [#allocation7]  }
0x1323   :  { %s1487_s17 = sshll.u32 %s1970_s13, 4  ;;  %s1488_s17 = int_to_ptr.vmem [resolvable:$true] %s1487_s17 }
0x1324   :  { %v1871_v39 = vpop.eup %1870  ;;  %v1390_v62 = vadd.f32 1e-05, %v1388_v38 }
0x1325   :  { %v1392_v41 = vmul.f32 %v1871_v39, %v1389_v34  ;;  %vm1398_vm14 = vweird.f32 %v1871_v39 }
0x1326   :  { %1872 = vrsqrt.f32 %v1390_v62  ;;  %vm1399_vm1 = vmor %vm1397_vm15, %vm1398_vm14  ;;  %vm1407_vm3 = vweird.f32 %v1390_v62 }
0x1327   :  { %v1393_v42 = vmul.f32 %v1871_v39, %v1392_v41 }
0x1329   :  { %v1394_v43 = vmul.f32 0.5, %v1393_v42 }
0x132b   :  { %v1395_v45 = vsub.f32 1.5, %v1394_v43 }
0x132c   :  { %v1873_v46 = vpop.eup %1872 }
0x132d   :  { %v1396_v47 = vmul.f32 %v1871_v39, %v1395_v45  ;;  %v1402_v13 = vmul.f32 %v1873_v46, %v1390_v62  ;;  %vm1408_vm2 = vweird.f32 %v1873_v46 }
0x132e   :  { %vm1409_vm4 = vmor %vm1407_vm3, %vm1408_vm2 }
0x132f   :  { %v1403_v48 = vmul.f32 %v1873_v46, %v1402_v13  ;;  %v1400_v12 = vsel %vm1399_vm1, %v1871_v39, %v1396_v47 }
0x1330   :  { %v1411_v51 = vmul.f32 %v1400_v12, %v1377_v17 }
0x1331   :  { %v1404_v49 = vmul.f32 0.5, %v1403_v48 }
0x1332   :  { %v1416_v40 = vmul.f32 %v1778_v10, %v1411_v51 }
0x1333   :  { %v1405_v50 = vsub.f32 1.5, %v1404_v49 }
0x1334   :  { %v1421_v59 = vadd.f32 %v1779_v55, %v1416_v40 }
0x1335   :  { %v1406_v22 = vmul.f32 %v1873_v46, %v1405_v50 }
0x1337   :  { %v1410_v53 = vsel %vm1409_vm4, %v1873_v46, %v1406_v22 }
0x1338   :  { %v1412_v56 = vmul.f32 %v1410_v53, %v1378_v20 }
0x133a   :  { %v1417_v57 = vmul.f32 %v1778_v10, %v1412_v56 }
0x133c   :  { %v1422_v60 = vadd.f32 %v1779_v55, %v1417_v57 }
0x133e   :  { %v1423_v44 = vpack.c.bf16 %v1422_v60, %v1421_v59 }
0x1340   :  { %1680 = vmatmul.msk.bf16.vlgmr.msra.gmra.mxu0 %vm93_vm0, %v1423_v44  ;;  %1681 = vmatmul.msk.bf16.vlgmr.msra.gmra.mxu1 %vm93_vm0, %v1423_v44 }
0x13bd   :  { %v1460_v61 = vpop.f32.mrf.mxu0  ;;  %v1474_v63 = vpop.f32.mrf.mxu1 }
0x13be   :  { %1479 = vst [vmem:[#allocation7] sm:$0xff] %v1460_v61 }
0x13bf   :  { %1480 = vst [vmem:[#allocation7 + $0x8] sm:$0xff] %v1474_v63 }
0x13c5   :  { %v1462_v1 = vpop.f32.mrf.mxu0  ;;  %v1476_v3 = vpop.f32.mrf.mxu1 }
0x13c6   :  { %1481 = vst [vmem:[#allocation7 + $0x10] sm:$0xff] %v1462_v1 }
0x13c7   :  { %1482 = vst [vmem:[#allocation7 + $0x18] sm:$0xff] %v1476_v3 }
0x13c8   :  { %1495 = dma.vmem_to_hbm [thread:$0]  %s1488_s17, 512, %s1490_s14, [#allocation4], %s1971_s18, %s1971_s18, %s2497_s1  }
0x13c9   :  { %1950 = dma.done.wait [#allocation4], 512  }
0x13ca   :  { %1951 = vsyncadd [#allocation4], 4294966784 }
0x13cb   :  { %1500 = vsyncpa [#allocation3], 1 }
0x13cc   :  { %1501 = vsyncpa [#allocation6], 1 }
0x13cd   :  { %1502 = vsyncpa [#allocation4], 1 }

</bundles_post_ra>
